<compile_context>
chip_gen: v7x
topology: tpu7x:2x2x1
jax: 0.10.0
libtpu: 0.0.40
codegen_flags: <defaults>
</compile_context>

<pallas_src>
import functools

import jax
import jax.numpy as jnp
from jax.experimental import pallas as pl
from jax.experimental.pallas import tpu as pltpu

LN_EPS = 1e-5
LANE = 128
BATCH_ALIGN = 16   # bf16 sublane packing (2 x 8): keep batch tiles 16-aligned


def _round_up(x, m):
    return (x + m - 1) // m * m


def _vmem_capacity_bytes():
    """Per-core VMEM capacity; conservative 64 MiB (v7x) if query fails."""
    try:
        info = pltpu.get_tpu_info()
        cap = getattr(info, "vmem_capacity_bytes", None)
        if cap:
            return int(cap)
    except Exception:
        pass
    return 64 * 1024 * 1024


def _choose_tb(B, block_batch):
    """Pick a batch tile: waste-minimizing, 16-aligned, >=2 grid steps when possible."""
    B_align = _round_up(B, BATCH_ALIGN)
    if B_align <= BATCH_ALIGN:
        return BATCH_ALIGN
    # Cap TB at ~half the batch so the grid has >=2 steps (v7x: 2 TensorCores).
    cap = max(BATCH_ALIGN,
              min(block_batch, _round_up(pl.cdiv(B_align, 2), BATCH_ALIGN)))
    floor = 64 if B_align >= 64 else BATCH_ALIGN
    cands = [c for c in (1024, 512, 256, 128, 64, 32, 16) if floor <= c <= cap]
    if not cands:
        return cap
    best_tb, best_waste = None, None
    for tb in cands:                      # descending: prefer larger tile on ties
        waste = _round_up(B_align, tb) - B_align
        if best_waste is None or waste < best_waste:
            best_tb, best_waste = tb, waste
    return best_tb


def _hidden_block_kernel(n_hidden_stages, true_hidden, *refs):
    """Fused [(Linear -> LayerNorm -> SiLU)] x n_hidden_stages -> Linear on one batch tile.

    refs layout:
      refs[0]    : x tile (TB, in_pad)  bf16  VMEM
      refs[1:-1] : per hidden stage (W bf16, b f32, gamma f32, beta f32),
                   then final (W_out bf16, b_out f32) — all lane-dense padded,
                   VMEM-resident (constant index_map, single-buffered).
      refs[-1]   : out tile (TB, out_pad) f32 VMEM
    """
    x_ref = refs[0]
    out_ref = refs[-1]
    params = refs[1:-1]

    inv_h = jnp.float32(1.0 / true_hidden)
    h_mxu = x_ref[...]                       # already bf16
    idx = 0
    for _ in range(n_hidden_stages):
        w, b, gamma, beta = (params[idx], params[idx + 1],
                             params[idx + 2], params[idx + 3])
        idx += 4
        # Linear on the MXU: bf16 operands, f32 accumulation.
        h = jnp.dot(h_mxu, w[...], preferred_element_type=jnp.float32) + b[...]
        # LayerNorm over the true (unpadded) width; padded lanes of h are 0,
        # so sums are unaffected.  Clamp var >= 0 (cancellation safety).
        s = jnp.sum(h, axis=-1, keepdims=True)
        s2 = jnp.sum(h * h, axis=-1, keepdims=True)
        mean = s * inv_h
        var = jnp.maximum(s2 * inv_h - mean * mean, 0.0)
        h = (h - mean) * jax.lax.rsqrt(var + LN_EPS)
        # gamma/beta are zero in padded lanes -> padded lanes return to exactly 0.
        h = h * gamma[...] + beta[...]
        # SiLU in f32 (v5e has no bf16 VPU/EUP); SiLU(0) == 0 keeps padding zero.
        h = h * jax.nn.sigmoid(h)
        # Dropout: identity at inference time.
        # TODO(synk): training-mode dropout via pltpu.prng_random_bits mask.
        h_mxu = h.astype(jnp.bfloat16)

    w_out, b_out = params[idx], params[idx + 1]
    out = jnp.dot(h_mxu, w_out[...], preferred_element_type=jnp.float32) + b_out[...]
    out_ref[...] = out.astype(out_ref.dtype)


def hidden_block_forward(x, params, output_dim, *, block_batch=512):
    """params: flat list [W1, b1, g1, beta1, ..., W_out, b_out].

    Weights stored (in_features, out_features); biases/gamma/beta are (1, H).
    """
    n_hidden_stages = (len(params) - 2) // 4
    B, input_dim = x.shape
    hidden_dim = params[0].shape[1]

    # Lane-dense padded feature dims.
    in_pad = _round_up(input_dim, LANE)
    hid_pad = _round_up(hidden_dim, LANE)
    out_pad = _round_up(output_dim, LANE)

    # --- batch tile selection + per-generation VMEM budget -----------------
    TB = _choose_tb(B, block_batch)

    def _vmem_need(tb):
        w_bytes = (in_pad * hid_pad
                   + (n_hidden_stages - 1) * hid_pad * hid_pad
                   + hid_pad * out_pad) * 2                     # bf16, 1 buffer
        vec_bytes = (3 * n_hidden_stages * hid_pad + out_pad) * 4  # f32 vectors
        x_bytes = 2 * tb * in_pad * 2                           # bf16, 2 buffers
        o_bytes = 2 * tb * out_pad * 4                          # f32, 2 buffers
        act_bytes = 3 * tb * hid_pad * 4                        # f32 working set
        return w_bytes + vec_bytes + x_bytes + o_bytes + act_bytes

    usable = int(_vmem_capacity_bytes() * 0.85)
    while TB > BATCH_ALIGN and _vmem_need(TB) > usable:
        TB = max(BATCH_ALIGN, _round_up(TB // 2, BATCH_ALIGN))
    need = _vmem_need(TB)
    vmem_limit = int(min(usable, max(need + (8 << 20), 32 << 20)))
    # TODO(synk): if need > usable even at TB=BATCH_ALIGN, fall back to a
    # contraction-tiled (second "arbitrary" grid axis) variant instead of
    # requiring all weights resident.

    B_pad = _round_up(_round_up(B, BATCH_ALIGN), TB)
    grid = (B_pad // TB,)

    # --- zero-pad activations / parameters to lane-dense shapes ------------
    # x: bf16 payload (halves DMA bytes; MXU operands are bf16 anyway).
    x_p = jnp.zeros((B_pad, in_pad), jnp.bfloat16).at[:B, :input_dim].set(
        x.astype(jnp.bfloat16))

    padded_params = []
    idx = 0
    d_in, d_in_pad = input_dim, in_pad
    for _ in range(n_hidden_stages):
        w, b, g, beta = params[idx:idx + 4]
        idx += 4
        padded_params.append(
            jnp.zeros((d_in_pad, hid_pad), jnp.bfloat16)
            .at[:d_in, :hidden_dim].set(w.astype(jnp.bfloat16)))
        padded_params.append(
            jnp.zeros((1, hid_pad), jnp.float32).at[:, :hidden_dim].set(b.reshape(1, -1)))
        padded_params.append(
            jnp.zeros((1, hid_pad), jnp.float32).at[:, :hidden_dim].set(g.reshape(1, -1)))
        padded_params.append(
            jnp.zeros((1, hid_pad), jnp.float32).at[:, :hidden_dim].set(beta.reshape(1, -1)))
        d_in, d_in_pad = hidden_dim, hid_pad
    w_out, b_out = params[idx], params[idx + 1]
    padded_params.append(
        jnp.zeros((hid_pad, out_pad), jnp.bfloat16)
        .at[:hidden_dim, :output_dim].set(w_out.astype(jnp.bfloat16)))
    padded_params.append(
        jnp.zeros((1, out_pad), jnp.float32).at[:, :output_dim].set(b_out.reshape(1, -1)))

    # --- specs --------------------------------------------------------------
    def _param_spec(arr, single_buffer):
        shape = arr.shape
        idx_map = lambda i, _n=len(shape): (0,) * _n   # constant: weights stay resident
        if single_buffer:
            try:
                return pl.BlockSpec(shape, idx_map, pipeline_mode=pl.Buffered(1))
            except TypeError:
                return pl.BlockSpec(shape, idx_map)
        return pl.BlockSpec(shape, idx_map)

    x_spec = pl.BlockSpec((TB, in_pad), lambda i: (i, 0))
    out_spec = pl.BlockSpec((TB, out_pad), lambda i: (i, 0))

    flops = 2 * B_pad * (in_pad * hid_pad
                         + (n_hidden_stages - 1) * hid_pad * hid_pad
                         + hid_pad * out_pad)
    transcendentals = B_pad * hid_pad * n_hidden_stages           # sigmoid
    bytes_accessed = (x_p.size * 2
                      + sum(int(p.size) * p.dtype.itemsize for p in padded_params)
                      + B_pad * out_pad * 4)
    cost = pl.CostEstimate(flops=int(flops),
                           transcendentals=int(transcendentals),
                           bytes_accessed=int(bytes_accessed))

    kernel = functools.partial(_hidden_block_kernel, n_hidden_stages, hidden_dim)

    def _call(single_buffer):
        in_specs = ([x_spec]
                    + [_param_spec(p, single_buffer) for p in padded_params])
        return pl.pallas_call(
            kernel,
            out_shape=jax.ShapeDtypeStruct((B_pad, out_pad), jnp.float32),
            grid=grid,
            in_specs=in_specs,
            out_specs=out_spec,
            compiler_params=pltpu.CompilerParams(
                dimension_semantics=("parallel",),
                vmem_limit_bytes=vmem_limit,
            ),
            cost_estimate=cost,
        )(x_p, *padded_params)

    try:
        out_padded = _call(True)        # single-buffered resident parameters
    except Exception:
        out_padded = _call(False)       # fallback: default double-buffering

    return out_padded[:B, :output_dim]


def init_params(key, input_dim, hidden_dim, output_dim, depth):
    """Deterministic init mimicking nn.Linear (uniform +-1/sqrt(fan_in)) and
    nn.LayerNorm (gamma=1, beta=0).  Weights stored (in, out)."""
    params = []
    dims_in = [input_dim] + [hidden_dim] * depth
    for d_in in dims_in:
        key, kw, kb = jax.random.split(key, 3)
        bound = 1.0 / jnp.sqrt(d_in)
        w = jax.random.uniform(kw, (d_in, hidden_dim), jnp.float32, -bound, bound)
        b = jax.random.uniform(kb, (1, hidden_dim), jnp.float32, -bound, bound)
        gamma = jnp.ones((1, hidden_dim), jnp.float32)
        beta = jnp.zeros((1, hidden_dim), jnp.float32)
        params.extend([w, b, gamma, beta])
    key, kw, kb = jax.random.split(key, 3)
    bound = 1.0 / jnp.sqrt(hidden_dim)
    w_out = jax.random.uniform(kw, (hidden_dim, output_dim), jnp.float32, -bound, bound)
    b_out = jax.random.uniform(kb, (1, output_dim), jnp.float32, -bound, bound)
    params.extend([w_out, b_out])
    return params


def reference_forward(x, params):
    """Pure-JAX f32 reference (matches PyTorch eval-mode forward)."""
    n_hidden_stages = (len(params) - 2) // 4
    h = x
    idx = 0
    for _ in range(n_hidden_stages):
        w, b, g, beta = params[idx:idx + 4]
        idx += 4
        h = h @ w + b
        mean = jnp.mean(h, axis=-1, keepdims=True)
        var = jnp.mean((h - mean) ** 2, axis=-1, keepdims=True)
        h = (h - mean) / jnp.sqrt(var + LN_EPS) * g + beta
        h = h * jax.nn.sigmoid(h)
    w_out, b_out = params[idx], params[idx + 1]
    return h @ w_out + b_out


if __name__ == "__main__":
    key = jax.random.PRNGKey(0)

    # Case 1: depth=1 (3 linear layers), module-consistent small shapes.
    batch, input_dim, hidden_dim, output_dim, depth = 8, 32, 64, 16, 1
    key, kx = jax.random.split(key)
    x = jax.random.normal(kx, (batch, input_dim), jnp.float32)
    params = init_params(key, input_dim, hidden_dim, output_dim, depth)
    out = jax.block_until_ready(hidden_block_forward(x, params, output_dim))
    ref = reference_forward(x, params)
    assert out.shape == (batch, output_dim)
    # bf16 MXU operands (f32 accumulation) -> relaxed tolerance vs f32 reference.
    assert jnp.allclose(out, ref, atol=2e-2, rtol=2e-2), (
        f"case1 max abs err {jnp.max(jnp.abs(out - ref))}")

    # Case 2: depth=0 (2 linear layers), awkward unaligned dims exercise padding.
    batch2, in2, hid2, out2, depth2 = 5, 20, 48, 10, 0
    key, kx2, kp2 = jax.random.split(key, 3)
    x2 = jax.random.normal(kx2, (batch2, in2), jnp.float32)
    params2 = init_params(kp2, in2, hid2, out2, depth2)
    o2 = jax.block_until_ready(hidden_block_forward(x2, params2, out2))
    r2 = reference_forward(x2, params2)
    assert o2.shape == (batch2, out2)
    assert jnp.allclose(o2, r2, atol=2e-2, rtol=2e-2), (
        f"case2 max abs err {jnp.max(jnp.abs(o2 - r2))}")

    print("KERNEL_OK")
</pallas_src>

<mosaic_0001>
module attributes {stable_mosaic.version = 11 : i64} {
  func.func @_hidden_block_kernel(%arg0: i32, %arg1: memref<16x128xbf16, #tpu.memory_space<vmem>>, %arg2: memref<128x128xbf16, #tpu.memory_space<vmem>>, %arg3: memref<1x128xf32, #tpu.memory_space<vmem>>, %arg4: memref<1x128xf32, #tpu.memory_space<vmem>>, %arg5: memref<1x128xf32, #tpu.memory_space<vmem>>, %arg6: memref<128x128xbf16, #tpu.memory_space<vmem>>, %arg7: memref<1x128xf32, #tpu.memory_space<vmem>>, %arg8: memref<1x128xf32, #tpu.memory_space<vmem>>, %arg9: memref<1x128xf32, #tpu.memory_space<vmem>>, %arg10: memref<128x128xbf16, #tpu.memory_space<vmem>>, %arg11: memref<1x128xf32, #tpu.memory_space<vmem>>, %arg12: memref<16x128xf32, #tpu.memory_space<vmem>>) attributes {dimension_semantics = [#tpu.dimension_semantics<parallel>], iteration_bounds = array<i64: 1>, scalar_prefetch = 0 : i64, scratch_operands = 0 : i64, tpu.core_type = #tpu.core_type<tc>, window_params = [{transform_indices = @transform_0, window_bounds = array<i64: 16, 128>}, {pipeline_mode = #tpu.pipeline_mode<synchronous>, transform_indices = @transform_1, window_bounds = array<i64: 128, 128>}, {pipeline_mode = #tpu.pipeline_mode<synchronous>, transform_indices = @transform_2, window_bounds = array<i64: 1, 128>}, {pipeline_mode = #tpu.pipeline_mode<synchronous>, transform_indices = @transform_3, window_bounds = array<i64: 1, 128>}, {pipeline_mode = #tpu.pipeline_mode<synchronous>, transform_indices = @transform_4, window_bounds = array<i64: 1, 128>}, {pipeline_mode = #tpu.pipeline_mode<synchronous>, transform_indices = @transform_5, window_bounds = array<i64: 128, 128>}, {pipeline_mode = #tpu.pipeline_mode<synchronous>, transform_indices = @transform_6, window_bounds = array<i64: 1, 128>}, {pipeline_mode = #tpu.pipeline_mode<synchronous>, transform_indices = @transform_7, window_bounds = array<i64: 1, 128>}, {pipeline_mode = #tpu.pipeline_mode<synchronous>, transform_indices = @transform_8, window_bounds = array<i64: 1, 128>}, {pipeline_mode = #tpu.pipeline_mode<synchronous>, transform_indices = @transform_9, window_bounds = array<i64: 128, 128>}, {pipeline_mode = #tpu.pipeline_mode<synchronous>, transform_indices = @transform_10, window_bounds = array<i64: 1, 128>}, {transform_indices = @transform_11, window_bounds = array<i64: 16, 128>}]} {
    %c0 = arith.constant 0 : index
    %c0_0 = arith.constant 0 : index
    %0 = vector.load %arg1[%c0, %c0_0] : memref<16x128xbf16, #tpu.memory_space<vmem>>, vector<16x128xbf16>
    %c0_1 = arith.constant 0 : index
    %c0_2 = arith.constant 0 : index
    %1 = vector.load %arg2[%c0_1, %c0_2] : memref<128x128xbf16, #tpu.memory_space<vmem>>, vector<128x128xbf16>
    %cst = arith.constant dense<0.000000e+00> : vector<16x128xf32>
    %2 = tpu.matmul %0, %1, %cst {dimension_numbers = #tpu.dot_dimension_numbers<[1], [0], [0], [1], [0, 0, 1, 1], [], []>} : vector<16x128xbf16>, vector<128x128xbf16>, vector<16x128xf32> -> vector<16x128xf32>
    %c0_3 = arith.constant 0 : index
    %c0_4 = arith.constant 0 : index
    %3 = vector.load %arg3[%c0_3, %c0_4] : memref<1x128xf32, #tpu.memory_space<vmem>>, vector<1x128xf32>
    %4 = vector.broadcast %3 : vector<1x128xf32> to vector<16x128xf32>
    %5 = arith.addf %2, %4 : vector<16x128xf32>
    %cst_5 = arith.constant dense<0.000000e+00> : vector<16xf32>
    %6 = vector.multi_reduction <add>, %5, %cst_5 [1] : vector<16x128xf32> to vector<16xf32>
    %7 = vector.shape_cast %6 : vector<16xf32> to vector<16x1xf32>
    %8 = arith.mulf %5, %5 : vector<16x128xf32>
    %cst_6 = arith.constant dense<0.000000e+00> : vector<16xf32>
    %9 = vector.multi_reduction <add>, %8, %cst_6 [1] : vector<16x128xf32> to vector<16xf32>
    %10 = vector.shape_cast %9 : vector<16xf32> to vector<16x1xf32>
    %cst_7 = arith.constant 1.562500e-02 : f32
    %11 = vector.broadcast %cst_7 : f32 to vector<16x1xf32>
    %12 = arith.mulf %7, %11 : vector<16x1xf32>
    %cst_8 = arith.constant 1.562500e-02 : f32
    %13 = vector.broadcast %cst_8 : f32 to vector<16x1xf32>
    %14 = arith.mulf %10, %13 : vector<16x1xf32>
    %15 = arith.mulf %12, %12 : vector<16x1xf32>
    %16 = arith.subf %14, %15 : vector<16x1xf32>
    %cst_9 = arith.constant 0.000000e+00 : f32
    %17 = vector.broadcast %cst_9 : f32 to vector<16x1xf32>
    %18 = arith.maximumf %16, %17 : vector<16x1xf32>
    %19 = vector.broadcast %12 : vector<16x1xf32> to vector<16x128xf32>
    %20 = arith.subf %5, %19 : vector<16x128xf32>
    %cst_10 = arith.constant 9.99999974E-6 : f32
    %21 = vector.broadcast %cst_10 : f32 to vector<16x1xf32>
    %22 = arith.addf %18, %21 : vector<16x1xf32>
    %23 = math.rsqrt %22 : vector<16x1xf32>
    %24 = vector.broadcast %23 : vector<16x1xf32> to vector<16x128xf32>
    %25 = arith.mulf %20, %24 : vector<16x128xf32>
    %c0_11 = arith.constant 0 : index
    %c0_12 = arith.constant 0 : index
    %26 = vector.load %arg4[%c0_11, %c0_12] : memref<1x128xf32, #tpu.memory_space<vmem>>, vector<1x128xf32>
    %27 = vector.broadcast %26 : vector<1x128xf32> to vector<16x128xf32>
    %28 = arith.mulf %25, %27 : vector<16x128xf32>
    %c0_13 = arith.constant 0 : index
    %c0_14 = arith.constant 0 : index
    %29 = vector.load %arg5[%c0_13, %c0_14] : memref<1x128xf32, #tpu.memory_space<vmem>>, vector<1x128xf32>
    %30 = vector.broadcast %29 : vector<1x128xf32> to vector<16x128xf32>
    %31 = arith.addf %28, %30 : vector<16x128xf32>
    %32 = arith.negf %31 : vector<16x128xf32>
    %33 = math.exp %32 : vector<16x128xf32>
    %cst_15 = arith.constant 1.000000e+00 : f32
    %34 = vector.broadcast %cst_15 : f32 to vector<16x128xf32>
    %35 = arith.addf %34, %33 : vector<16x128xf32>
    %36 = arith.divf %34, %35 : vector<16x128xf32>
    %37 = arith.mulf %31, %36 : vector<16x128xf32>
    %38 = arith.truncf %37 : vector<16x128xf32> to vector<16x128xbf16>
    %c0_16 = arith.constant 0 : index
    %c0_17 = arith.constant 0 : index
    %39 = vector.load %arg6[%c0_16, %c0_17] : memref<128x128xbf16, #tpu.memory_space<vmem>>, vector<128x128xbf16>
    %cst_18 = arith.constant dense<0.000000e+00> : vector<16x128xf32>
    %40 = tpu.matmul %38, %39, %cst_18 {dimension_numbers = #tpu.dot_dimension_numbers<[1], [0], [0], [1], [0, 0, 1, 1], [], []>} : vector<16x128xbf16>, vector<128x128xbf16>, vector<16x128xf32> -> vector<16x128xf32>
    %c0_19 = arith.constant 0 : index
    %c0_20 = arith.constant 0 : index
    %41 = vector.load %arg7[%c0_19, %c0_20] : memref<1x128xf32, #tpu.memory_space<vmem>>, vector<1x128xf32>
    %42 = vector.broadcast %41 : vector<1x128xf32> to vector<16x128xf32>
    %43 = arith.addf %40, %42 : vector<16x128xf32>
    %cst_21 = arith.constant dense<0.000000e+00> : vector<16xf32>
    %44 = vector.multi_reduction <add>, %43, %cst_21 [1] : vector<16x128xf32> to vector<16xf32>
    %45 = vector.shape_cast %44 : vector<16xf32> to vector<16x1xf32>
    %46 = arith.mulf %43, %43 : vector<16x128xf32>
    %cst_22 = arith.constant dense<0.000000e+00> : vector<16xf32>
    %47 = vector.multi_reduction <add>, %46, %cst_22 [1] : vector<16x128xf32> to vector<16xf32>
    %48 = vector.shape_cast %47 : vector<16xf32> to vector<16x1xf32>
    %cst_23 = arith.constant 1.562500e-02 : f32
    %49 = vector.broadcast %cst_23 : f32 to vector<16x1xf32>
    %50 = arith.mulf %45, %49 : vector<16x1xf32>
    %cst_24 = arith.constant 1.562500e-02 : f32
    %51 = vector.broadcast %cst_24 : f32 to vector<16x1xf32>
    %52 = arith.mulf %48, %51 : vector<16x1xf32>
    %53 = arith.mulf %50, %50 : vector<16x1xf32>
    %54 = arith.subf %52, %53 : vector<16x1xf32>
    %cst_25 = arith.constant 0.000000e+00 : f32
    %55 = vector.broadcast %cst_25 : f32 to vector<16x1xf32>
    %56 = arith.maximumf %54, %55 : vector<16x1xf32>
    %57 = vector.broadcast %50 : vector<16x1xf32> to vector<16x128xf32>
    %58 = arith.subf %43, %57 : vector<16x128xf32>
    %cst_26 = arith.constant 9.99999974E-6 : f32
    %59 = vector.broadcast %cst_26 : f32 to vector<16x1xf32>
    %60 = arith.addf %56, %59 : vector<16x1xf32>
    %61 = math.rsqrt %60 : vector<16x1xf32>
    %62 = vector.broadcast %61 : vector<16x1xf32> to vector<16x128xf32>
    %63 = arith.mulf %58, %62 : vector<16x128xf32>
    %c0_27 = arith.constant 0 : index
    %c0_28 = arith.constant 0 : index
    %64 = vector.load %arg8[%c0_27, %c0_28] : memref<1x128xf32, #tpu.memory_space<vmem>>, vector<1x128xf32>
    %65 = vector.broadcast %64 : vector<1x128xf32> to vector<16x128xf32>
    %66 = arith.mulf %63, %65 : vector<16x128xf32>
    %c0_29 = arith.constant 0 : index
    %c0_30 = arith.constant 0 : index
    %67 = vector.load %arg9[%c0_29, %c0_30] : memref<1x128xf32, #tpu.memory_space<vmem>>, vector<1x128xf32>
    %68 = vector.broadcast %67 : vector<1x128xf32> to vector<16x128xf32>
    %69 = arith.addf %66, %68 : vector<16x128xf32>
    %70 = arith.negf %69 : vector<16x128xf32>
    %71 = math.exp %70 : vector<16x128xf32>
    %cst_31 = arith.constant 1.000000e+00 : f32
    %72 = vector.broadcast %cst_31 : f32 to vector<16x128xf32>
    %73 = arith.addf %72, %71 : vector<16x128xf32>
    %74 = arith.divf %72, %73 : vector<16x128xf32>
    %75 = arith.mulf %69, %74 : vector<16x128xf32>
    %76 = arith.truncf %75 : vector<16x128xf32> to vector<16x128xbf16>
    %c0_32 = arith.constant 0 : index
    %c0_33 = arith.constant 0 : index
    %77 = vector.load %arg10[%c0_32, %c0_33] : memref<128x128xbf16, #tpu.memory_space<vmem>>, vector<128x128xbf16>
    %cst_34 = arith.constant dense<0.000000e+00> : vector<16x128xf32>
    %78 = tpu.matmul %76, %77, %cst_34 {dimension_numbers = #tpu.dot_dimension_numbers<[1], [0], [0], [1], [0, 0, 1, 1], [], []>} : vector<16x128xbf16>, vector<128x128xbf16>, vector<16x128xf32> -> vector<16x128xf32>
    %c0_35 = arith.constant 0 : index
    %c0_36 = arith.constant 0 : index
    %79 = vector.load %arg11[%c0_35, %c0_36] : memref<1x128xf32, #tpu.memory_space<vmem>>, vector<1x128xf32>
    %80 = vector.broadcast %79 : vector<1x128xf32> to vector<16x128xf32>
    %81 = arith.addf %78, %80 : vector<16x128xf32>
    %c0_37 = arith.constant 0 : index
    %c0_38 = arith.constant 0 : index
    %82 = vector.load %arg12[%c0_37, %c0_38] : memref<16x128xf32, #tpu.memory_space<vmem>>, vector<16x128xf32>
    tpu.vector_store %arg12[%c0_37, %c0_38], %81 {strides = array<i32>} : memref<16x128xf32, #tpu.memory_space<vmem>>, vector<16x128xf32>,
    return
  }
  func.func @transform_0(%arg0: i32) -> (i32, i32) {
    %c0_i32 = arith.constant 0 : i32
    %c0_i32_0 = arith.constant 0 : i32
    return %arg0, %c0_i32 : i32, i32
  }
  func.func @transform_1(%arg0: i32) -> (i32, i32) {
    %c0_i32 = arith.constant 0 : i32
    %c0_i32_0 = arith.constant 0 : i32
    %c0_i32_1 = arith.constant 0 : i32
    return %c0_i32, %c0_i32_0 : i32, i32
  }
  func.func @transform_2(%arg0: i32) -> (i32, i32) {
    %c0_i32 = arith.constant 0 : i32
    %c0_i32_0 = arith.constant 0 : i32
    %c0_i32_1 = arith.constant 0 : i32
    return %c0_i32, %c0_i32_0 : i32, i32
  }
  func.func @transform_3(%arg0: i32) -> (i32, i32) {
    %c0_i32 = arith.constant 0 : i32
    %c0_i32_0 = arith.constant 0 : i32
    %c0_i32_1 = arith.constant 0 : i32
    return %c0_i32, %c0_i32_0 : i32, i32
  }
  func.func @transform_4(%arg0: i32) -> (i32, i32) {
    %c0_i32 = arith.constant 0 : i32
    %c0_i32_0 = arith.constant 0 : i32
    %c0_i32_1 = arith.constant 0 : i32
    return %c0_i32, %c0_i32_0 : i32, i32
  }
  func.func @transform_5(%arg0: i32) -> (i32, i32) {
    %c0_i32 = arith.constant 0 : i32
    %c0_i32_0 = arith.constant 0 : i32
    %c0_i32_1 = arith.constant 0 : i32
    return %c0_i32, %c0_i32_0 : i32, i32
  }
  func.func @transform_6(%arg0: i32) -> (i32, i32) {
    %c0_i32 = arith.constant 0 : i32
    %c0_i32_0 = arith.constant 0 : i32
    %c0_i32_1 = arith.constant 0 : i32
    return %c0_i32, %c0_i32_0 : i32, i32
  }
  func.func @transform_7(%arg0: i32) -> (i32, i32) {
    %c0_i32 = arith.constant 0 : i32
    %c0_i32_0 = arith.constant 0 : i32
    %c0_i32_1 = arith.constant 0 : i32
    return %c0_i32, %c0_i32_0 : i32, i32
  }
  func.func @transform_8(%arg0: i32) -> (i32, i32) {
    %c0_i32 = arith.constant 0 : i32
    %c0_i32_0 = arith.constant 0 : i32
    %c0_i32_1 = arith.constant 0 : i32
    return %c0_i32, %c0_i32_0 : i32, i32
  }
  func.func @transform_9(%arg0: i32) -> (i32, i32) {
    %c0_i32 = arith.constant 0 : i32
    %c0_i32_0 = arith.constant 0 : i32
    %c0_i32_1 = arith.constant 0 : i32
    return %c0_i32, %c0_i32_0 : i32, i32
  }
  func.func @transform_10(%arg0: i32) -> (i32, i32) {
    %c0_i32 = arith.constant 0 : i32
    %c0_i32_0 = arith.constant 0 : i32
    %c0_i32_1 = arith.constant 0 : i32
    return %c0_i32, %c0_i32_0 : i32, i32
  }
  func.func @transform_11(%arg0: i32) -> (i32, i32) {
    %c0_i32 = arith.constant 0 : i32
    %c0_i32_0 = arith.constant 0 : i32
    return %arg0, %c0_i32 : i32, i32
  }
}

module attributes {stable_mosaic.version = 11 : i64} {
  func.func @_hidden_block_kernel(%arg0: i32, %arg1: memref<16x128xbf16, #tpu.memory_space<vmem>>, %arg2: memref<128x128xbf16, #tpu.memory_space<vmem>>, %arg3: memref<1x128xf32, #tpu.memory_space<vmem>>, %arg4: memref<1x128xf32, #tpu.memory_space<vmem>>, %arg5: memref<1x128xf32, #tpu.memory_space<vmem>>, %arg6: memref<128x128xbf16, #tpu.memory_space<vmem>>, %arg7: memref<1x128xf32, #tpu.memory_space<vmem>>, %arg8: memref<1x128xf32, #tpu.memory_space<vmem>>, %arg9: memref<1x128xf32, #tpu.memory_space<vmem>>, %arg10: memref<128x128xbf16, #tpu.memory_space<vmem>>, %arg11: memref<1x128xf32, #tpu.memory_space<vmem>>, %arg12: memref<16x128xf32, #tpu.memory_space<vmem>>) attributes {dimension_semantics = [#tpu.dimension_semantics<parallel>], iteration_bounds = array<i64: 1>, scalar_prefetch = 0 : i64, scratch_operands = 0 : i64, tpu.core_type = #tpu.core_type<tc>, window_params = [{transform_indices = @transform_0, window_bounds = array<i64: 16, 128>}, {pipeline_mode = #tpu.pipeline_mode<synchronous>, transform_indices = @transform_1, window_bounds = array<i64: 128, 128>}, {pipeline_mode = #tpu.pipeline_mode<synchronous>, transform_indices = @transform_2, window_bounds = array<i64: 1, 128>}, {pipeline_mode = #tpu.pipeline_mode<synchronous>, transform_indices = @transform_3, window_bounds = array<i64: 1, 128>}, {pipeline_mode = #tpu.pipeline_mode<synchronous>, transform_indices = @transform_4, window_bounds = array<i64: 1, 128>}, {pipeline_mode = #tpu.pipeline_mode<synchronous>, transform_indices = @transform_5, window_bounds = array<i64: 128, 128>}, {pipeline_mode = #tpu.pipeline_mode<synchronous>, transform_indices = @transform_6, window_bounds = array<i64: 1, 128>}, {pipeline_mode = #tpu.pipeline_mode<synchronous>, transform_indices = @transform_7, window_bounds = array<i64: 1, 128>}, {pipeline_mode = #tpu.pipeline_mode<synchronous>, transform_indices = @transform_8, window_bounds = array<i64: 1, 128>}, {pipeline_mode = #tpu.pipeline_mode<synchronous>, transform_indices = @transform_9, window_bounds = array<i64: 128, 128>}, {pipeline_mode = #tpu.pipeline_mode<synchronous>, transform_indices = @transform_10, window_bounds = array<i64: 1, 128>}, {transform_indices = @transform_11, window_bounds = array<i64: 16, 128>}]} {
    %c0 = arith.constant 0 : index
    %c0_0 = arith.constant 0 : index
    %0 = vector.load %arg1[%c0, %c0_0] : memref<16x128xbf16, #tpu.memory_space<vmem>>, vector<16x128xbf16>
    %c0_1 = arith.constant 0 : index
    %c0_2 = arith.constant 0 : index
    %1 = vector.load %arg2[%c0_1, %c0_2] : memref<128x128xbf16, #tpu.memory_space<vmem>>, vector<128x128xbf16>
    %cst = arith.constant dense<0.000000e+00> : vector<16x128xf32>
    %2 = tpu.matmul %0, %1, %cst {dimension_numbers = #tpu.dot_dimension_numbers<[1], [0], [0], [1], [0, 0, 1, 1], [], []>} : vector<16x128xbf16>, vector<128x128xbf16>, vector<16x128xf32> -> vector<16x128xf32>
    %c0_3 = arith.constant 0 : index
    %c0_4 = arith.constant 0 : index
    %3 = vector.load %arg3[%c0_3, %c0_4] : memref<1x128xf32, #tpu.memory_space<vmem>>, vector<1x128xf32>
    %4 = vector.broadcast %3 : vector<1x128xf32> to vector<16x128xf32>
    %5 = arith.addf %2, %4 : vector<16x128xf32>
    %cst_5 = arith.constant dense<0.000000e+00> : vector<16xf32>
    %6 = vector.multi_reduction <add>, %5, %cst_5 [1] : vector<16x128xf32> to vector<16xf32>
    %7 = vector.shape_cast %6 : vector<16xf32> to vector<16x1xf32>
    %8 = arith.mulf %5, %5 : vector<16x128xf32>
    %cst_6 = arith.constant dense<0.000000e+00> : vector<16xf32>
    %9 = vector.multi_reduction <add>, %8, %cst_6 [1] : vector<16x128xf32> to vector<16xf32>
    %10 = vector.shape_cast %9 : vector<16xf32> to vector<16x1xf32>
    %cst_7 = arith.constant 1.562500e-02 : f32
    %11 = vector.broadcast %cst_7 : f32 to vector<16x1xf32>
    %12 = arith.mulf %7, %11 : vector<16x1xf32>
    %cst_8 = arith.constant 1.562500e-02 : f32
    %13 = vector.broadcast %cst_8 : f32 to vector<16x1xf32>
    %14 = arith.mulf %10, %13 : vector<16x1xf32>
    %15 = arith.mulf %12, %12 : vector<16x1xf32>
    %16 = arith.subf %14, %15 : vector<16x1xf32>
    %cst_9 = arith.constant 0.000000e+00 : f32
    %17 = vector.broadcast %cst_9 : f32 to vector<16x1xf32>
    %18 = arith.maximumf %16, %17 : vector<16x1xf32>
    %19 = vector.broadcast %12 : vector<16x1xf32> to vector<16x128xf32>
    %20 = arith.subf %5, %19 : vector<16x128xf32>
    %cst_10 = arith.constant 9.99999974E-6 : f32
    %21 = vector.broadcast %cst_10 : f32 to vector<16x1xf32>
    %22 = arith.addf %18, %21 : vector<16x1xf32>
    %23 = math.rsqrt %22 : vector<16x1xf32>
    %24 = vector.broadcast %23 : vector<16x1xf32> to vector<16x128xf32>
    %25 = arith.mulf %20, %24 : vector<16x128xf32>
    %c0_11 = arith.constant 0 : index
    %c0_12 = arith.constant 0 : index
    %26 = vector.load %arg4[%c0_11, %c0_12] : memref<1x128xf32, #tpu.memory_space<vmem>>, vector<1x128xf32>
    %27 = vector.broadcast %26 : vector<1x128xf32> to vector<16x128xf32>
    %28 = arith.mulf %25, %27 : vector<16x128xf32>
    %c0_13 = arith.constant 0 : index
    %c0_14 = arith.constant 0 : index
    %29 = vector.load %arg5[%c0_13, %c0_14] : memref<1x128xf32, #tpu.memory_space<vmem>>, vector<1x128xf32>
    %30 = vector.broadcast %29 : vector<1x128xf32> to vector<16x128xf32>
    %31 = arith.addf %28, %30 : vector<16x128xf32>
    %32 = arith.negf %31 : vector<16x128xf32>
    %33 = math.exp %32 : vector<16x128xf32>
    %cst_15 = arith.constant 1.000000e+00 : f32
    %34 = vector.broadcast %cst_15 : f32 to vector<16x128xf32>
    %35 = arith.addf %34, %33 : vector<16x128xf32>
    %36 = arith.divf %34, %35 : vector<16x128xf32>
    %37 = arith.mulf %31, %36 : vector<16x128xf32>
    %38 = arith.truncf %37 : vector<16x128xf32> to vector<16x128xbf16>
    %c0_16 = arith.constant 0 : index
    %c0_17 = arith.constant 0 : index
    %39 = vector.load %arg6[%c0_16, %c0_17] : memref<128x128xbf16, #tpu.memory_space<vmem>>, vector<128x128xbf16>
    %cst_18 = arith.constant dense<0.000000e+00> : vector<16x128xf32>
    %40 = tpu.matmul %38, %39, %cst_18 {dimension_numbers = #tpu.dot_dimension_numbers<[1], [0], [0], [1], [0, 0, 1, 1], [], []>} : vector<16x128xbf16>, vector<128x128xbf16>, vector<16x128xf32> -> vector<16x128xf32>
    %c0_19 = arith.constant 0 : index
    %c0_20 = arith.constant 0 : index
    %41 = vector.load %arg7[%c0_19, %c0_20] : memref<1x128xf32, #tpu.memory_space<vmem>>, vector<1x128xf32>
    %42 = vector.broadcast %41 : vector<1x128xf32> to vector<16x128xf32>
    %43 = arith.addf %40, %42 : vector<16x128xf32>
    %cst_21 = arith.constant dense<0.000000e+00> : vector<16xf32>
    %44 = vector.multi_reduction <add>, %43, %cst_21 [1] : vector<16x128xf32> to vector<16xf32>
    %45 = vector.shape_cast %44 : vector<16xf32> to vector<16x1xf32>
    %46 = arith.mulf %43, %43 : vector<16x128xf32>
    %cst_22 = arith.constant dense<0.000000e+00> : vector<16xf32>
    %47 = vector.multi_reduction <add>, %46, %cst_22 [1] : vector<16x128xf32> to vector<16xf32>
    %48 = vector.shape_cast %47 : vector<16xf32> to vector<16x1xf32>
    %cst_23 = arith.constant 1.562500e-02 : f32
    %49 = vector.broadcast %cst_23 : f32 to vector<16x1xf32>
    %50 = arith.mulf %45, %49 : vector<16x1xf32>
    %cst_24 = arith.constant 1.562500e-02 : f32
    %51 = vector.broadcast %cst_24 : f32 to vector<16x1xf32>
    %52 = arith.mulf %48, %51 : vector<16x1xf32>
    %53 = arith.mulf %50, %50 : vector<16x1xf32>
    %54 = arith.subf %52, %53 : vector<16x1xf32>
    %cst_25 = arith.constant 0.000000e+00 : f32
    %55 = vector.broadcast %cst_25 : f32 to vector<16x1xf32>
    %56 = arith.maximumf %54, %55 : vector<16x1xf32>
    %57 = vector.broadcast %50 : vector<16x1xf32> to vector<16x128xf32>
    %58 = arith.subf %43, %57 : vector<16x128xf32>
    %cst_26 = arith.constant 9.99999974E-6 : f32
    %59 = vector.broadcast %cst_26 : f32 to vector<16x1xf32>
    %60 = arith.addf %56, %59 : vector<16x1xf32>
    %61 = math.rsqrt %60 : vector<16x1xf32>
    %62 = vector.broadcast %61 : vector<16x1xf32> to vector<16x128xf32>
    %63 = arith.mulf %58, %62 : vector<16x128xf32>
    %c0_27 = arith.constant 0 : index
    %c0_28 = arith.constant 0 : index
    %64 = vector.load %arg8[%c0_27, %c0_28] : memref<1x128xf32, #tpu.memory_space<vmem>>, vector<1x128xf32>
    %65 = vector.broadcast %64 : vector<1x128xf32> to vector<16x128xf32>
    %66 = arith.mulf %63, %65 : vector<16x128xf32>
    %c0_29 = arith.constant 0 : index
    %c0_30 = arith.constant 0 : index
    %67 = vector.load %arg9[%c0_29, %c0_30] : memref<1x128xf32, #tpu.memory_space<vmem>>, vector<1x128xf32>
    %68 = vector.broadcast %67 : vector<1x128xf32> to vector<16x128xf32>
    %69 = arith.addf %66, %68 : vector<16x128xf32>
    %70 = arith.negf %69 : vector<16x128xf32>
    %71 = math.exp %70 : vector<16x128xf32>
    %cst_31 = arith.constant 1.000000e+00 : f32
    %72 = vector.broadcast %cst_31 : f32 to vector<16x128xf32>
    %73 = arith.addf %72, %71 : vector<16x128xf32>
    %74 = arith.divf %72, %73 : vector<16x128xf32>
    %75 = arith.mulf %69, %74 : vector<16x128xf32>
    %76 = arith.truncf %75 : vector<16x128xf32> to vector<16x128xbf16>
    %c0_32 = arith.constant 0 : index
    %c0_33 = arith.constant 0 : index
    %77 = vector.load %arg10[%c0_32, %c0_33] : memref<128x128xbf16, #tpu.memory_space<vmem>>, vector<128x128xbf16>
    %cst_34 = arith.constant dense<0.000000e+00> : vector<16x128xf32>
    %78 = tpu.matmul %76, %77, %cst_34 {dimension_numbers = #tpu.dot_dimension_numbers<[1], [0], [0], [1], [0, 0, 1, 1], [], []>} : vector<16x128xbf16>, vector<128x128xbf16>, vector<16x128xf32> -> vector<16x128xf32>
    %c0_35 = arith.constant 0 : index
    %c0_36 = arith.constant 0 : index
    %79 = vector.load %arg11[%c0_35, %c0_36] : memref<1x128xf32, #tpu.memory_space<vmem>>, vector<1x128xf32>
    %80 = vector.broadcast %79 : vector<1x128xf32> to vector<16x128xf32>
    %81 = arith.addf %78, %80 : vector<16x128xf32>
    %c0_37 = arith.constant 0 : index
    %c0_38 = arith.constant 0 : index
    %82 = vector.load %arg12[%c0_37, %c0_38] : memref<16x128xf32, #tpu.memory_space<vmem>>, vector<16x128xf32>
    tpu.vector_store %arg12[%c0_37, %c0_38], %81 {strides = array<i32>} : memref<16x128xf32, #tpu.memory_space<vmem>>, vector<16x128xf32>,
    return
  }
  func.func @transform_0(%arg0: i32) -> (i32, i32) {
    %c0_i32 = arith.constant 0 : i32
    %c0_i32_0 = arith.constant 0 : i32
    return %arg0, %c0_i32 : i32, i32
  }
  func.func @transform_1(%arg0: i32) -> (i32, i32) {
    %c0_i32 = arith.constant 0 : i32
    %c0_i32_0 = arith.constant 0 : i32
    %c0_i32_1 = arith.constant 0 : i32
    return %c0_i32, %c0_i32_0 : i32, i32
  }
  func.func @transform_2(%arg0: i32) -> (i32, i32) {
    %c0_i32 = arith.constant 0 : i32
    %c0_i32_0 = arith.constant 0 : i32
    %c0_i32_1 = arith.constant 0 : i32
    return %c0_i32, %c0_i32_0 : i32, i32
  }
  func.func @transform_3(%arg0: i32) -> (i32, i32) {
    %c0_i32 = arith.constant 0 : i32
    %c0_i32_0 = arith.constant 0 : i32
    %c0_i32_1 = arith.constant 0 : i32
    return %c0_i32, %c0_i32_0 : i32, i32
  }
  func.func @transform_4(%arg0: i32) -> (i32, i32) {
    %c0_i32 = arith.constant 0 : i32
    %c0_i32_0 = arith.constant 0 : i32
    %c0_i32_1 = arith.constant 0 : i32
    return %c0_i32, %c0_i32_0 : i32, i32
  }
  func.func @transform_5(%arg0: i32) -> (i32, i32) {
    %c0_i32 = arith.constant 0 : i32
    %c0_i32_0 = arith.constant 0 : i32
    %c0_i32_1 = arith.constant 0 : i32
    return %c0_i32, %c0_i32_0 : i32, i32
  }
  func.func @transform_6(%arg0: i32) -> (i32, i32) {
    %c0_i32 = arith.constant 0 : i32
    %c0_i32_0 = arith.constant 0 : i32
    %c0_i32_1 = arith.constant 0 : i32
    return %c0_i32, %c0_i32_0 : i32, i32
  }
  func.func @transform_7(%arg0: i32) -> (i32, i32) {
    %c0_i32 = arith.constant 0 : i32
    %c0_i32_0 = arith.constant 0 : i32
    %c0_i32_1 = arith.constant 0 : i32
    return %c0_i32, %c0_i32_0 : i32, i32
  }
  func.func @transform_8(%arg0: i32) -> (i32, i32) {
    %c0_i32 = arith.constant 0 : i32
    %c0_i32_0 = arith.constant 0 : i32
    %c0_i32_1 = arith.constant 0 : i32
    return %c0_i32, %c0_i32_0 : i32, i32
  }
  func.func @transform_9(%arg0: i32) -> (i32, i32) {
    %c0_i32 = arith.constant 0 : i32
    %c0_i32_0 = arith.constant 0 : i32
    %c0_i32_1 = arith.constant 0 : i32
    return %c0_i32, %c0_i32_0 : i32, i32
  }
  func.func @transform_10(%arg0: i32) -> (i32, i32) {
    %c0_i32 = arith.constant 0 : i32
    %c0_i32_0 = arith.constant 0 : i32
    %c0_i32_1 = arith.constant 0 : i32
    return %c0_i32, %c0_i32_0 : i32, i32
  }
  func.func @transform_11(%arg0: i32) -> (i32, i32) {
    %c0_i32 = arith.constant 0 : i32
    %c0_i32_0 = arith.constant 0 : i32
    return %arg0, %c0_i32 : i32, i32
  }
}

</mosaic_0001>

<bundles_post_ra>
// kernel: tpu_custom_call.1
= control target key start
LH: loop header
LB: loop body
LE: loop exit
PB: predicated region body
PF: predicated region fallthrough
CT: control target
= control target key end

     0   :  { %16 = vsyncpa [#allocation3], 0  ;;  %s1091_s0 = inlined_call_operand.hbm [shape: bf16[16,128], index: 0, kind: input, shape index: {}]   ;;  %s1092_s1 = inlined_call_operand.hbm [shape: bf16[128,128], index: 1, kind: input, shape index: {}]   ;;  %s1093_s2 = inlined_call_operand.vmem [shape: f32[1,128], index: 2, kind: input, shape index: {}]   ;;  %s1094_s3 = inlined_call_operand.vmem [shape: f32[1,128], index: 3, kind: input, shape index: {}]   ;;  %s1095_s4 = inlined_call_operand.vmem [shape: f32[1,128], index: 4, kind: input, shape index: {}]   ;;  %s1096_s5 = inlined_call_operand.hbm [shape: bf16[128,128], index: 5, kind: input, shape index: {}]   ;;  %s1097_s6 = inlined_call_operand.vmem [shape: f32[1,128], index: 6, kind: input, shape index: {}]   ;;  %s1098_s7 = inlined_call_operand.vmem [shape: f32[1,128], index: 7, kind: input, shape index: {}]   ;;  %s1099_s8 = inlined_call_operand.vmem [shape: f32[1,128], index: 8, kind: input, shape index: {}]   ;;  %s1100_s9 = inlined_call_operand.hbm [shape: bf16[128,128], index: 9, kind: input, shape index: {}]   ;;  %s1101_s10 = inlined_call_operand.vmem [shape: f32[1,128], index: 10, kind: input, shape index: {}]   ;;  %s1102_s11 = inlined_call_operand.hbm [shape: f32[16,128], index: 11, kind: output, shape index: {}]  }
   0x1   :  { %17 = vsyncpa [#allocation6], 0 }
   0x2   :  { %18 = vsyncpa [#allocation9], 0 }
   0x3   :  { %19 = vsyncpa [#allocation4], 0  ;;  %s883_s17 = smov [#allocation5]   ;;  %s884_s19 = smov [#allocation2]  }
   0x4   :  { %s37_s18 = sshll.u32 %s883_s17, 4  ;;  %s25_s20 = sshll.u32 %s884_s19, 4  ;;  %s38_s18 = int_to_ptr.vmem [resolvable:$true] %s37_s18  ;;  %s954_s20 = int_to_ptr.vmem [resolvable:$true] %s25_s20 }
   0x5   :  { %s765_s23 = scalar_lea.hbm %s1092_s1, 1024 }
   0x6   :  { %p766_p0 = scmp.ne.s32.totalorder %s1092_s1, %s765_s23  ;;  %p769_p1 = scmp.lt.u32.totalorder %s765_s23, %s1092_s1 }
   0x8   :  { %p771_p2 = pnand %p769_p1, %p766_p0 }
   0xa   :  { %774 = shalt.err (!%p771_p2)
}
   0xb   :  { %s775_s28 = scalar_lea.vmem %s38_s18, 1024  ;;  %p780_p4 = scmp.lt.s32.totalorder %s38_s18, %s38_s18 }
   0xc   :  { %p776_p3 = scmp.ne.s32.totalorder %s38_s18, %s775_s28  ;;  %p781_p5 = scmp.lt.s32.totalorder %s775_s28, %s775_s28 }
   0xe   :  { %p782_p6 = por %p781_p5, %p780_p4 }
  0x10   :  { %p783_p7 = pnand %p782_p6, %p776_p3 }
  0x12   :  { %786 = shalt.err (!%p783_p7)
}
  0x13   :  { %s885_s29 = smov 64   ;;  %s886_s30 = smov 4  }
  0x14   :  { %43 = dma.hbm_to_vmem [thread:$0]  %s1092_s1, 1024, %s38_s18, [#allocation6], %s885_s29, %s885_s29, %s886_s30  }
  0x15   :  { %s787_s16 = scalar_lea.hbm %s1091_s0, 128 }
  0x16   :  { %p788_p8 = scmp.ne.s32.totalorder %s1091_s0, %s787_s16  ;;  %p791_p9 = scmp.lt.u32.totalorder %s787_s16, %s1091_s0 }
  0x18   :  { %p793_p10 = pnand %p791_p9, %p788_p8 }
  0x1a   :  { %796 = shalt.err (!%p793_p10)
}
  0x1b   :  { %s797_s23 = scalar_lea.vmem %s954_s20, 128  ;;  %p802_p12 = scmp.lt.s32.totalorder %s954_s20, %s954_s20 }
  0x1c   :  { %p798_p11 = scmp.ne.s32.totalorder %s954_s20, %s797_s23  ;;  %p803_p13 = scmp.lt.s32.totalorder %s797_s23, %s797_s23 }
  0x1e   :  { %p804_p0 = por %p803_p13, %p802_p12 }
  0x20   :  { %p805_p1 = pnand %p804_p0, %p798_p11 }
  0x22   :  { %808 = shalt.err (!%p805_p1)
}
  0x23   :  { %31 = dma.hbm_to_vmem [thread:$0]  %s1091_s0, 128, %s954_s20, [#allocation3], %s885_s29, %s885_s29, %s886_s30  }
  0x24   :  { %s887_s24 = smov [#allocation7]   ;;  %s888_s26 = smov [#allocation8]  }
  0x25   :  { %s55_s25 = sshll.u32 %s887_s24, 4  ;;  %s73_s27 = sshll.u32 %s888_s26, 4  ;;  %s56_s25 = int_to_ptr.vmem [resolvable:$true] %s55_s25  ;;  %s991_s27 = int_to_ptr.vmem [resolvable:$true] %s73_s27 }
  0x26   :  { %s809_s13 = scalar_lea.hbm %s1096_s5, 1024 }
  0x27   :  { %p810_p2 = scmp.ne.s32.totalorder %s1096_s5, %s809_s13  ;;  %p813_p3 = scmp.lt.u32.totalorder %s809_s13, %s1096_s5 }
  0x29   :  { %p815_p4 = pnand %p813_p3, %p810_p2 }
  0x2b   :  { %818 = shalt.err (!%p815_p4)
}
  0x2c   :  { %s819_s0 = scalar_lea.vmem %s56_s25, 1024  ;;  %p824_p6 = scmp.lt.s32.totalorder %s56_s25, %s56_s25 }
  0x2d   :  { %p820_p5 = scmp.ne.s32.totalorder %s56_s25, %s819_s0  ;;  %p825_p7 = scmp.lt.s32.totalorder %s819_s0, %s819_s0 }
  0x2f   :  { %p826_p8 = por %p825_p7, %p824_p6 }
  0x31   :  { %p827_p9 = pnand %p826_p8, %p820_p5 }
  0x33   :  { %830 = shalt.err (!%p827_p9)
}
  0x34   :  { %61 = dma.hbm_to_vmem [thread:$0]  %s1096_s5, 1024, %s56_s25, [#allocation6], %s885_s29, %s885_s29, %s886_s30  }
  0x35   :  { %s831_s23 = scalar_lea.hbm %s1100_s9, 1024 }
  0x36   :  { %p832_p10 = scmp.ne.s32.totalorder %s1100_s9, %s831_s23  ;;  %p835_p11 = scmp.lt.u32.totalorder %s831_s23, %s1100_s9 }
  0x38   :  { %p837_p12 = pnand %p835_p11, %p832_p10 }
  0x3a   :  { %840 = shalt.err (!%p837_p12)
}
  0x3b   :  { %s841_s28 = scalar_lea.vmem %s991_s27, 1024  ;;  %p846_p0 = scmp.lt.s32.totalorder %s991_s27, %s991_s27 }
  0x3c   :  { %p842_p13 = scmp.ne.s32.totalorder %s991_s27, %s841_s28  ;;  %p847_p1 = scmp.lt.s32.totalorder %s841_s28, %s841_s28 }
  0x3e   :  { %p848_p2 = por %p847_p1, %p846_p0 }
  0x40   :  { %p849_p3 = pnand %p848_p2, %p842_p13 }
  0x42   :  { %852 = shalt.err (!%p849_p3)
}
  0x43   :  { %79 = dma.hbm_to_vmem [thread:$0]  %s1100_s9, 1024, %s991_s27, [#allocation9], %s885_s29, %s885_s29, %s886_s30  }
  0x44   :  { %875 = dma.done.wait [#allocation3], 128  }
  0x45   :  { %876 = vsyncadd [#allocation3], 4294967168 }
  0x46   :  { %877 = dma.done.wait [#allocation6], 2048  }
  0x47   :  { %878 = vsyncadd [#allocation6], 4294965248 }
  0x48   :  { %879 = dma.done.wait [#allocation9], 1024  }
  0x49   :  { %880 = vsyncadd [#allocation9], 4294966272  ;;  %v889_v0 = vmov 0.0   ;;  %vm890_vm0 = vmmov 0   ;;  %v716_v1 = vld [vmem:[#allocation5] sm:$0xff]   ;;  %v717_v2 = vld [vmem:[#allocation5 + $0x8] sm:$0xff]  }
  0x4a   :  { %645 = vmatprep.subr.bf16.mxu0 %v889_v0  ;;  %661 = vmatprep.mubr.msk.bf16.mxu0 %vm890_vm0, %v889_v0  ;;  %v718_v3 = vld [vmem:[#allocation5 + $0x10] sm:$0xff]   ;;  %v719_v4 = vld [vmem:[#allocation5 + $0x18] sm:$0xff]   ;;  %v720_v5 = vld [vmem:[#allocation5 + $0x20] sm:$0xff]   ;;  %s891_s16 = smov [#allocation10]  }
  0x4b   :  { %665 = vmatprep.subr.bf16.mxu1 %v889_v0  ;;  %681 = vmatprep.mubr.msk.bf16.mxu1 %vm890_vm0, %v889_v0  ;;  %v721_v6 = vld [vmem:[#allocation5 + $0x28] sm:$0xff]   ;;  %v722_v7 = vld [vmem:[#allocation5 + $0x30] sm:$0xff]   ;;  %v723_v8 = vld [vmem:[#allocation5 + $0x38] sm:$0xff]   ;;  %s568_s17 = sshll.u32 %s891_s16, 4  ;;  %s569_s17 = int_to_ptr.vmem [resolvable:$true] %s568_s17 }
  0x4c   :  { %646 = vmatpush3.bf16.msra.mxu0 %v716_v1  ;;  %v724_v9 = vld [vmem:[#allocation2] sm:$0xff]   ;;  %v725_v19 = vld [vmem:[#allocation7] sm:$0xff]   ;;  %v726_v20 = vld [vmem:[#allocation7 + $0x8] sm:$0xff]   ;;  %s853_s0 = scalar_lea.vmem %s569_s17, 256  ;;  %p858_p5 = scmp.lt.s32.totalorder %s569_s17, %s569_s17 }
  0x4d   :  { %647 = vmatprep.subr.bf16.mxu0 %v889_v0  ;;  %v582_v10 = vld [vmem:[%s1093_s2] ss:$0 sm:$0xff]  ;;  %666 = vmatpush3.bf16.msra.mxu1 %v725_v19  ;;  %v727_v21 = vld [vmem:[#allocation7 + $0x10] sm:$0xff]   ;;  %v729_v23 = vld [vmem:[#allocation7 + $0x20] sm:$0xff]   ;;  %p854_p4 = scmp.ne.s32.totalorder %s569_s17, %s853_s0  ;;  %p859_p6 = scmp.lt.s32.totalorder %s853_s0, %s853_s0 }
  0x4e   :  { %667 = vmatprep.subr.bf16.mxu1 %v889_v0  ;;  %v728_v22 = vld [vmem:[#allocation7 + $0x18] sm:$0xff]   ;;  %v730_v24 = vld [vmem:[#allocation7 + $0x28] sm:$0xff]   ;;  %v731_v25 = vld [vmem:[#allocation7 + $0x30] sm:$0xff]  }
  0x4f   :  { %v732_v26 = vld [vmem:[#allocation7 + $0x38] sm:$0xff]   ;;  %p860_p7 = por %p859_p6, %p858_p5 }
  0x50   :  { %648 = vmatpush3.bf16.msra.mxu0 %v717_v2  ;;  %v592_v45 = vld [vmem:[%s1094_s3] ss:$0 sm:$0xff] }
  0x51   :  { %649 = vmatprep.subr.bf16.mxu0 %v889_v0  ;;  %668 = vmatpush3.bf16.msra.mxu1 %v726_v20  ;;  %v593_v47 = vld [vmem:[%s1095_s4] ss:$0 sm:$0xff]  ;;  %p861_p8 = pnand %p860_p7, %p854_p4 }
  0x52   :  { %669 = vmatprep.subr.bf16.mxu1 %v889_v0  ;;  %v740_v19 = vld [vmem:[#allocation8 + $0x38] sm:$0xff]  }
  0x54   :  { %650 = vmatpush3.bf16.msra.mxu0 %v718_v3  ;;  %v596_v3 = vld [vmem:[%s1097_s6] ss:$0 sm:$0xff] }
  0x55   :  { %651 = vmatprep.subr.bf16.mxu0 %v889_v0  ;;  %670 = vmatpush3.bf16.msra.mxu1 %v727_v21 }
  0x56   :  { %671 = vmatprep.subr.bf16.mxu1 %v889_v0 }
  0x58   :  { %652 = vmatpush3.bf16.msra.mxu0 %v719_v4 }
  0x59   :  { %653 = vmatprep.subr.bf16.mxu0 %v889_v0  ;;  %672 = vmatpush3.bf16.msra.mxu1 %v728_v22 }
  0x5a   :  { %673 = vmatprep.subr.bf16.mxu1 %v889_v0 }
  0x5c   :  { %654 = vmatpush3.bf16.msra.mxu0 %v720_v5 }
  0x5d   :  { %655 = vmatprep.subr.bf16.mxu0 %v889_v0  ;;  %674 = vmatpush3.bf16.msra.mxu1 %v729_v23 }
  0x5e   :  { %675 = vmatprep.subr.bf16.mxu1 %v889_v0 }
  0x60   :  { %656 = vmatpush3.bf16.msra.mxu0 %v721_v6 }
  0x61   :  { %657 = vmatprep.subr.bf16.mxu0 %v889_v0  ;;  %676 = vmatpush3.bf16.msra.mxu1 %v730_v24 }
  0x62   :  { %677 = vmatprep.subr.bf16.mxu1 %v889_v0 }
  0x64   :  { %658 = vmatpush3.bf16.msra.mxu0 %v722_v7 }
  0x65   :  { %659 = vmatprep.subr.bf16.mxu0 %v889_v0  ;;  %678 = vmatpush3.bf16.msra.mxu1 %v731_v25 }
  0x66   :  { %679 = vmatprep.subr.bf16.mxu1 %v889_v0 }
  0x68   :  { %660 = vmatpush3.bf16.msra.mxu0 %v723_v8 }
  0x69   :  { %685 = vmatprep.subr.bf16.mxu0 %v889_v0  ;;  %680 = vmatpush3.bf16.msra.mxu1 %v732_v26 }
  0x6b   :  { %662 = vmatmul.mubr.bf16.vlgmr.msra.gmra.mrb[0].mxu0 %v724_v9 }
  0x6c   :  { %701 = vmatprep.mubr.msk.bf16.mxu0 %vm890_vm0, %v889_v0 }
 0x13e   :  { %v208_v11 = vpop.f32.mrb[0].mxu0 }
 0x13f   :  { %v209_v12 = vadd.f32 %v582_v10, %v208_v11  ;;  %v663_v13 = vpop.f32.mrb[1].mxu0 }
 0x140   :  { %v211_v14 = vpop.f32.mrb[2].mxu0  ;;  %v734_v13 = vld [vmem:[#allocation8 + $0x8] sm:$0xff]  }
 0x141   :  { %v212_v15 = vadd.f32 %v582_v10, %v211_v14  ;;  %215 = vadd.xlane.f32.xlu0 %v209_v12  ;;  %v664_v16 = vpop.f32.mrb[3].mxu0  ;;  %v219_v17 = vmul.f32 %v209_v12, %v209_v12  ;;  %v735_v14 = vld [vmem:[#allocation8 + $0x10] sm:$0xff]  }
 0x142   :  { %v737_v16 = vld [vmem:[#allocation8 + $0x20] sm:$0xff]  }
 0x143   :  { %221 = vadd.xlane.f32.xlu1 %v219_v17  ;;  %v220_v18 = vmul.f32 %v212_v15, %v212_v15  ;;  %v738_v17 = vld [vmem:[#allocation8 + $0x28] sm:$0xff]  }
 0x145   :  { %217 = vadd.xlane.f32.xlu0 %v212_v15 }
 0x147   :  { %223 = vadd.xlane.f32.xlu1 %v220_v18  ;;  %v739_v18 = vld [vmem:[#allocation8 + $0x30] sm:$0xff]  }
 0x1ce   :  { %v216_v27 = vpop.xlane.xlu0 %215 }
 0x1cf   :  { %v225_v28 = vmul.f32 0.015625, %v216_v27 }
 0x1d0   :  { %v222_v29 = vpop.xlane.xlu1 %221 }
 0x1d1   :  { %v229_v30 = vmul.f32 %v225_v28, %v225_v28  ;;  %v227_v31 = vmul.f32 0.015625, %v222_v29  ;;  %v235_v43 = vsub.f32 %v209_v12, %v225_v28  ;;  %v733_v12 = vld [vmem:[#allocation8] sm:$0xff]  }
 0x1d2   :  { %v218_v32 = vpop.xlane.xlu0 %217  ;;  %686 = vmatpush3.bf16.msra.mxu0 %v733_v12 }
 0x1d3   :  { %v231_v33 = vsub.f32 %v227_v31, %v229_v30  ;;  %v226_v34 = vmul.f32 0.015625, %v218_v32  ;;  %687 = vmatprep.subr.bf16.mxu0 %v889_v0 }
 0x1d4   :  { %v224_v35 = vpop.xlane.xlu1 %223 }
 0x1d5   :  { %v233_v36 = vmax.f32 %v231_v33, 0.0  ;;  %v230_v37 = vmul.f32 %v226_v34, %v226_v34  ;;  %v228_v38 = vmul.f32 0.015625, %v224_v35  ;;  %v236_v48 = vsub.f32 %v212_v15, %v226_v34  ;;  %v736_v15 = vld [vmem:[#allocation8 + $0x18] sm:$0xff]  }
 0x1d6   :  { %688 = vmatpush3.bf16.msra.mxu0 %v734_v13 }
 0x1d7   :  { %v237_v39 = vadd.f32 1e-05, %v233_v36  ;;  %v232_v40 = vsub.f32 %v228_v38, %v230_v37  ;;  %689 = vmatprep.subr.bf16.mxu0 %v889_v0  ;;  %v605_v37 = vld [vmem:[%s1098_s7] ss:$0 sm:$0xff] }
 0x1d9   :  { %741 = vrsqrt.f32 %v237_v39  ;;  %v234_v41 = vmax.f32 %v232_v40, 0.0 }
 0x1da   :  { %690 = vmatpush3.bf16.msra.mxu0 %v735_v14 }
 0x1db   :  { %v238_v42 = vadd.f32 1e-05, %v234_v41  ;;  %691 = vmatprep.subr.bf16.mxu0 %v889_v0  ;;  %v606_v41 = vld [vmem:[%s1099_s8] ss:$0 sm:$0xff] }
 0x1dd   :  { %743 = vrsqrt.f32 %v238_v42 }
 0x1de   :  { %692 = vmatpush3.bf16.msra.mxu0 %v736_v15 }
 0x1df   :  { %693 = vmatprep.subr.bf16.mxu0 %v889_v0 }
 0x1e2   :  { %694 = vmatpush3.bf16.msra.mxu0 %v737_v16 }
 0x1e3   :  { %v742_v44 = vpop.eup %741  ;;  %695 = vmatprep.subr.bf16.mxu0 %v889_v0 }
 0x1e4   :  { %v241_v46 = vmul.f32 %v742_v44, %v235_v43 }
 0x1e6   :  { %v250_v49 = vmul.f32 %v592_v45, %v241_v46  ;;  %696 = vmatpush3.bf16.msra.mxu0 %v738_v17 }
 0x1e7   :  { %v744_v50 = vpop.eup %743  ;;  %697 = vmatprep.subr.bf16.mxu0 %v889_v0 }
 0x1e8   :  { %v242_v51 = vmul.f32 %v744_v50, %v236_v48  ;;  %v259_v52 = vadd.f32 %v593_v47, %v250_v49 }
 0x1ea   :  { %v251_v53 = vmul.f32 %v592_v45, %v242_v51  ;;  %v594_v54 = vmul.f32 -1.442695, %v259_v52  ;;  %698 = vmatpush3.bf16.msra.mxu0 %v739_v18 }
 0x1eb   :  { %699 = vmatprep.subr.bf16.mxu0 %v889_v0 }
 0x1ec   :  { %v260_v55 = vadd.f32 %v593_v47, %v251_v53  ;;  %745 = vpow2.f32 %v594_v54 }
 0x1ee   :  { %v595_v56 = vmul.f32 -1.442695, %v260_v55  ;;  %700 = vmatpush3.bf16.msra.mxu0 %v740_v19 }
 0x1f0   :  { %747 = vpow2.f32 %v595_v56 }
 0x1f6   :  { %v746_v57 = vpop.eup %745 }
 0x1f7   :  { %v267_v58 = vadd.f32 1.0, %v746_v57 }
 0x1f9   :  { %749 = vrcp.f32 %v267_v58  ;;  %v609_v58 = vld [vmem:[%s1101_s10] ss:$0 sm:$0xff] }
 0x1fa   :  { %v748_v59 = vpop.eup %747 }
 0x1fb   :  { %v268_v60 = vadd.f32 1.0, %v748_v59 }
 0x1fd   :  { %751 = vrcp.f32 %v268_v60 }
 0x203   :  { %v750_v61 = vpop.eup %749 }
 0x204   :  { %v273_v63 = vmul.f32 %v750_v61, %v259_v52 }
 0x207   :  { %v752_v62 = vpop.eup %751 }
 0x208   :  { %v274_v1 = vmul.f32 %v752_v62, %v260_v55 }
 0x20a   :  { %v275_v2 = vpack.c.bf16 %v274_v1, %v273_v63 }
 0x20c   :  { %682 = vmatmul.mubr.bf16.vlgmr.msra.gmra.mrb[0].mxu1 %v275_v2 }
 0x2df   :  { %v381_v4 = vpop.f32.mrb[0].mxu1 }
 0x2e0   :  { %v382_v5 = vadd.f32 %v596_v3, %v381_v4  ;;  %v683_v6 = vpop.f32.mrb[1].mxu1 }
 0x2e1   :  { %v384_v7 = vpop.f32.mrb[2].mxu1 }
 0x2e2   :  { %v385_v8 = vadd.f32 %v596_v3, %v384_v7  ;;  %388 = vadd.xlane.f32.xlu0 %v382_v5  ;;  %v684_v9 = vpop.f32.mrb[3].mxu1  ;;  %v392_v10 = vmul.f32 %v382_v5, %v382_v5 }
 0x2e4   :  { %390 = vadd.xlane.f32.xlu1 %v385_v8  ;;  %v393_v11 = vmul.f32 %v385_v8, %v385_v8 }
 0x2e6   :  { %394 = vadd.xlane.f32.xlu0 %v392_v10 }
 0x2e8   :  { %396 = vadd.xlane.f32.xlu1 %v393_v11 }
 0x36f   :  { %v389_v20 = vpop.xlane.xlu0 %388 }
 0x370   :  { %v398_v21 = vmul.f32 0.015625, %v389_v20 }
 0x371   :  { %v391_v22 = vpop.xlane.xlu1 %390 }
 0x372   :  { %v399_v23 = vmul.f32 0.015625, %v391_v22  ;;  %v402_v25 = vmul.f32 %v398_v21, %v398_v21  ;;  %v408_v0 = vsub.f32 %v382_v5, %v398_v21 }
 0x373   :  { %v395_v24 = vpop.xlane.xlu0 %394 }
 0x374   :  { %v400_v26 = vmul.f32 0.015625, %v395_v24  ;;  %v403_v28 = vmul.f32 %v399_v23, %v399_v23  ;;  %v409_v38 = vsub.f32 %v385_v8, %v399_v23 }
 0x375   :  { %v397_v27 = vpop.xlane.xlu1 %396 }
 0x376   :  { %v404_v29 = vsub.f32 %v400_v26, %v402_v25  ;;  %v401_v30 = vmul.f32 0.015625, %v397_v27 }
 0x378   :  { %v406_v31 = vmax.f32 %v404_v29, 0.0  ;;  %v405_v32 = vsub.f32 %v401_v30, %v403_v28 }
 0x37a   :  { %v410_v33 = vadd.f32 1e-05, %v406_v31  ;;  %v407_v34 = vmax.f32 %v405_v32, 0.0 }
 0x37c   :  { %753 = vrsqrt.f32 %v410_v33  ;;  %v411_v35 = vadd.f32 1e-05, %v407_v34 }
 0x37e   :  { %755 = vrsqrt.f32 %v411_v35 }
 0x386   :  { %v754_v36 = vpop.eup %753 }
 0x387   :  { %v414_v39 = vmul.f32 %v754_v36, %v408_v0 }
 0x388   :  { %v756_v40 = vpop.eup %755 }
 0x389   :  { %v415_v42 = vmul.f32 %v756_v40, %v409_v38  ;;  %v423_v43 = vmul.f32 %v605_v37, %v414_v39 }
 0x38b   :  { %v424_v44 = vmul.f32 %v605_v37, %v415_v42  ;;  %v432_v45 = vadd.f32 %v606_v41, %v423_v43 }
 0x38d   :  { %v433_v46 = vadd.f32 %v606_v41, %v424_v44  ;;  %v607_v47 = vmul.f32 -1.442695, %v432_v45 }
 0x38f   :  { %757 = vpow2.f32 %v607_v47  ;;  %v608_v48 = vmul.f32 -1.442695, %v433_v46 }
 0x391   :  { %759 = vpow2.f32 %v608_v48 }
 0x399   :  { %v758_v49 = vpop.eup %757 }
 0x39a   :  { %v440_v50 = vadd.f32 1.0, %v758_v49 }
 0x39b   :  { %v760_v51 = vpop.eup %759 }
 0x39c   :  { %v441_v52 = vadd.f32 1.0, %v760_v51  ;;  %761 = vrcp.f32 %v440_v50 }
 0x39e   :  { %763 = vrcp.f32 %v441_v52 }
 0x3a6   :  { %v762_v53 = vpop.eup %761 }
 0x3a7   :  { %v446_v55 = vmul.f32 %v762_v53, %v432_v45 }
 0x3a8   :  { %v764_v54 = vpop.eup %763 }
 0x3a9   :  { %v447_v56 = vmul.f32 %v764_v54, %v433_v46 }
 0x3ab   :  { %v448_v57 = vpack.c.bf16 %v447_v56, %v446_v55 }
 0x3ad   :  { %702 = vmatmul.mubr.bf16.vlgmr.msra.gmra.mrb[4].mxu0 %v448_v57 }
 0x480   :  { %v554_v59 = vpop.f32.mrb[4].mxu0 }
 0x481   :  { %v555_v60 = vadd.f32 %v609_v58, %v554_v59  ;;  %v703_v61 = vpop.f32.mrb[5].mxu0 }
 0x482   :  { %v557_v62 = vpop.f32.mrb[6].mxu0 }
 0x483   :  { %561 = vst [vmem:[#allocation10] sm:$0xff] %v555_v60  ;;  %v558_v63 = vadd.f32 %v609_v58, %v557_v62  ;;  %v704_v1 = vpop.f32.mrb[7].mxu0 }
 0x485   :  { %562 = vst [vmem:[#allocation10 + $0x8] sm:$0xff] %v558_v63 }
 0x486   :  { %864 = shalt.err (!%p861_p8)
}
 0x487   :  { %s865_s19 = scalar_lea.hbm %s1102_s11, 256 }
 0x488   :  { %p866_p9 = scmp.ne.s32.totalorder %s1102_s11, %s865_s19  ;;  %p869_p10 = scmp.lt.u32.totalorder %s865_s19, %s1102_s11 }
 0x48a   :  { %p871_p11 = pnand %p869_p10, %p866_p9 }
 0x48c   :  { %874 = shalt.err (!%p871_p11)
}
 0x48d   :  { %s892_s18 = smov 128   ;;  %s893_s24 = smov 8  }
 0x48e   :  { %574 = dma.vmem_to_hbm [thread:$0]  %s569_s17, 256, %s1102_s11, [#allocation4], %s892_s18, %s892_s18, %s893_s24  }
 0x48f   :  { %881 = dma.done.wait [#allocation4], 256  }
 0x490   :  { %882 = vsyncadd [#allocation4], 4294967040 }
 0x491   :  { %578 = vsyncpa [#allocation3], 1 }
 0x492   :  { %579 = vsyncpa [#allocation6], 1 }
 0x493   :  { %580 = vsyncpa [#allocation9], 1 }
 0x494   :  { %581 = vsyncpa [#allocation4], 1 }

// kernel: tpu_custom_call.1
= control target key start
LH: loop header
LB: loop body
LE: loop exit
PB: predicated region body
PF: predicated region fallthrough
CT: control target
= control target key end

     0   :  { %16 = vsyncpa [#allocation3], 0  ;;  %s1091_s0 = inlined_call_operand.hbm [shape: bf16[16,128], index: 0, kind: input, shape index: {}]   ;;  %s1092_s1 = inlined_call_operand.hbm [shape: bf16[128,128], index: 1, kind: input, shape index: {}]   ;;  %s1093_s2 = inlined_call_operand.vmem [shape: f32[1,128], index: 2, kind: input, shape index: {}]   ;;  %s1094_s3 = inlined_call_operand.vmem [shape: f32[1,128], index: 3, kind: input, shape index: {}]   ;;  %s1095_s4 = inlined_call_operand.vmem [shape: f32[1,128], index: 4, kind: input, shape index: {}]   ;;  %s1096_s5 = inlined_call_operand.hbm [shape: bf16[128,128], index: 5, kind: input, shape index: {}]   ;;  %s1097_s6 = inlined_call_operand.vmem [shape: f32[1,128], index: 6, kind: input, shape index: {}]   ;;  %s1098_s7 = inlined_call_operand.vmem [shape: f32[1,128], index: 7, kind: input, shape index: {}]   ;;  %s1099_s8 = inlined_call_operand.vmem [shape: f32[1,128], index: 8, kind: input, shape index: {}]   ;;  %s1100_s9 = inlined_call_operand.hbm [shape: bf16[128,128], index: 9, kind: input, shape index: {}]   ;;  %s1101_s10 = inlined_call_operand.vmem [shape: f32[1,128], index: 10, kind: input, shape index: {}]   ;;  %s1102_s11 = inlined_call_operand.hbm [shape: f32[16,128], index: 11, kind: output, shape index: {}]  }
   0x1   :  { %17 = vsyncpa [#allocation6], 0 }
   0x2   :  { %18 = vsyncpa [#allocation9], 0 }
   0x3   :  { %19 = vsyncpa [#allocation4], 0  ;;  %s883_s17 = smov [#allocation5]   ;;  %s884_s19 = smov [#allocation2]  }
   0x4   :  { %s37_s18 = sshll.u32 %s883_s17, 4  ;;  %s25_s20 = sshll.u32 %s884_s19, 4  ;;  %s38_s18 = int_to_ptr.vmem [resolvable:$true] %s37_s18  ;;  %s954_s20 = int_to_ptr.vmem [resolvable:$true] %s25_s20 }
   0x5   :  { %s765_s23 = scalar_lea.hbm %s1092_s1, 1024 }
   0x6   :  { %p766_p0 = scmp.ne.s32.totalorder %s1092_s1, %s765_s23  ;;  %p769_p1 = scmp.lt.u32.totalorder %s765_s23, %s1092_s1 }
   0x8   :  { %p771_p2 = pnand %p769_p1, %p766_p0 }
   0xa   :  { %774 = shalt.err (!%p771_p2)
}
   0xb   :  { %s775_s28 = scalar_lea.vmem %s38_s18, 1024  ;;  %p780_p4 = scmp.lt.s32.totalorder %s38_s18, %s38_s18 }
   0xc   :  { %p776_p3 = scmp.ne.s32.totalorder %s38_s18, %s775_s28  ;;  %p781_p5 = scmp.lt.s32.totalorder %s775_s28, %s775_s28 }
   0xe   :  { %p782_p6 = por %p781_p5, %p780_p4 }
  0x10   :  { %p783_p7 = pnand %p782_p6, %p776_p3 }
  0x12   :  { %786 = shalt.err (!%p783_p7)
}
  0x13   :  { %s885_s29 = smov 64   ;;  %s886_s30 = smov 4  }
  0x14   :  { %43 = dma.hbm_to_vmem [thread:$0]  %s1092_s1, 1024, %s38_s18, [#allocation6], %s885_s29, %s885_s29, %s886_s30  }
  0x15   :  { %s787_s16 = scalar_lea.hbm %s1091_s0, 128 }
  0x16   :  { %p788_p8 = scmp.ne.s32.totalorder %s1091_s0, %s787_s16  ;;  %p791_p9 = scmp.lt.u32.totalorder %s787_s16, %s1091_s0 }
  0x18   :  { %p793_p10 = pnand %p791_p9, %p788_p8 }
  0x1a   :  { %796 = shalt.err (!%p793_p10)
}
  0x1b   :  { %s797_s23 = scalar_lea.vmem %s954_s20, 128  ;;  %p802_p12 = scmp.lt.s32.totalorder %s954_s20, %s954_s20 }
  0x1c   :  { %p798_p11 = scmp.ne.s32.totalorder %s954_s20, %s797_s23  ;;  %p803_p13 = scmp.lt.s32.totalorder %s797_s23, %s797_s23 }
  0x1e   :  { %p804_p0 = por %p803_p13, %p802_p12 }
  0x20   :  { %p805_p1 = pnand %p804_p0, %p798_p11 }
  0x22   :  { %808 = shalt.err (!%p805_p1)
}
  0x23   :  { %31 = dma.hbm_to_vmem [thread:$0]  %s1091_s0, 128, %s954_s20, [#allocation3], %s885_s29, %s885_s29, %s886_s30  }
  0x24   :  { %s887_s24 = smov [#allocation7]   ;;  %s888_s26 = smov [#allocation8]  }
  0x25   :  { %s55_s25 = sshll.u32 %s887_s24, 4  ;;  %s73_s27 = sshll.u32 %s888_s26, 4  ;;  %s56_s25 = int_to_ptr.vmem [resolvable:$true] %s55_s25  ;;  %s991_s27 = int_to_ptr.vmem [resolvable:$true] %s73_s27 }
  0x26   :  { %s809_s13 = scalar_lea.hbm %s1096_s5, 1024 }
  0x27   :  { %p810_p2 = scmp.ne.s32.totalorder %s1096_s5, %s809_s13  ;;  %p813_p3 = scmp.lt.u32.totalorder %s809_s13, %s1096_s5 }
  0x29   :  { %p815_p4 = pnand %p813_p3, %p810_p2 }
  0x2b   :  { %818 = shalt.err (!%p815_p4)
}
  0x2c   :  { %s819_s0 = scalar_lea.vmem %s56_s25, 1024  ;;  %p824_p6 = scmp.lt.s32.totalorder %s56_s25, %s56_s25 }
  0x2d   :  { %p820_p5 = scmp.ne.s32.totalorder %s56_s25, %s819_s0  ;;  %p825_p7 = scmp.lt.s32.totalorder %s819_s0, %s819_s0 }
  0x2f   :  { %p826_p8 = por %p825_p7, %p824_p6 }
  0x31   :  { %p827_p9 = pnand %p826_p8, %p820_p5 }
  0x33   :  { %830 = shalt.err (!%p827_p9)
}
  0x34   :  { %61 = dma.hbm_to_vmem [thread:$0]  %s1096_s5, 1024, %s56_s25, [#allocation6], %s885_s29, %s885_s29, %s886_s30  }
  0x35   :  { %s831_s23 = scalar_lea.hbm %s1100_s9, 1024 }
  0x36   :  { %p832_p10 = scmp.ne.s32.totalorder %s1100_s9, %s831_s23  ;;  %p835_p11 = scmp.lt.u32.totalorder %s831_s23, %s1100_s9 }
  0x38   :  { %p837_p12 = pnand %p835_p11, %p832_p10 }
  0x3a   :  { %840 = shalt.err (!%p837_p12)
}
  0x3b   :  { %s841_s28 = scalar_lea.vmem %s991_s27, 1024  ;;  %p846_p0 = scmp.lt.s32.totalorder %s991_s27, %s991_s27 }
  0x3c   :  { %p842_p13 = scmp.ne.s32.totalorder %s991_s27, %s841_s28  ;;  %p847_p1 = scmp.lt.s32.totalorder %s841_s28, %s841_s28 }
  0x3e   :  { %p848_p2 = por %p847_p1, %p846_p0 }
  0x40   :  { %p849_p3 = pnand %p848_p2, %p842_p13 }
  0x42   :  { %852 = shalt.err (!%p849_p3)
}
  0x43   :  { %79 = dma.hbm_to_vmem [thread:$0]  %s1100_s9, 1024, %s991_s27, [#allocation9], %s885_s29, %s885_s29, %s886_s30  }
  0x44   :  { %875 = dma.done.wait [#allocation3], 128  }
  0x45   :  { %876 = vsyncadd [#allocation3], 4294967168 }
  0x46   :  { %877 = dma.done.wait [#allocation6], 2048  }
  0x47   :  { %878 = vsyncadd [#allocation6], 4294965248 }
  0x48   :  { %879 = dma.done.wait [#allocation9], 1024  }
  0x49   :  { %880 = vsyncadd [#allocation9], 4294966272  ;;  %v889_v0 = vmov 0.0   ;;  %vm890_vm0 = vmmov 0   ;;  %v716_v1 = vld [vmem:[#allocation5] sm:$0xff]   ;;  %v717_v2 = vld [vmem:[#allocation5 + $0x8] sm:$0xff]  }
  0x4a   :  { %645 = vmatprep.subr.bf16.mxu0 %v889_v0  ;;  %661 = vmatprep.mubr.msk.bf16.mxu0 %vm890_vm0, %v889_v0  ;;  %v718_v3 = vld [vmem:[#allocation5 + $0x10] sm:$0xff]   ;;  %v719_v4 = vld [vmem:[#allocation5 + $0x18] sm:$0xff]   ;;  %v720_v5 = vld [vmem:[#allocation5 + $0x20] sm:$0xff]   ;;  %s891_s16 = smov [#allocation10]  }
  0x4b   :  { %665 = vmatprep.subr.bf16.mxu1 %v889_v0  ;;  %681 = vmatprep.mubr.msk.bf16.mxu1 %vm890_vm0, %v889_v0  ;;  %v721_v6 = vld [vmem:[#allocation5 + $0x28] sm:$0xff]   ;;  %v722_v7 = vld [vmem:[#allocation5 + $0x30] sm:$0xff]   ;;  %v723_v8 = vld [vmem:[#allocation5 + $0x38] sm:$0xff]   ;;  %s568_s17 = sshll.u32 %s891_s16, 4  ;;  %s569_s17 = int_to_ptr.vmem [resolvable:$true] %s568_s17 }
  0x4c   :  { %646 = vmatpush3.bf16.msra.mxu0 %v716_v1  ;;  %v724_v9 = vld [vmem:[#allocation2] sm:$0xff]   ;;  %v725_v19 = vld [vmem:[#allocation7] sm:$0xff]   ;;  %v726_v20 = vld [vmem:[#allocation7 + $0x8] sm:$0xff]   ;;  %s853_s0 = scalar_lea.vmem %s569_s17, 256  ;;  %p858_p5 = scmp.lt.s32.totalorder %s569_s17, %s569_s17 }
  0x4d   :  { %647 = vmatprep.subr.bf16.mxu0 %v889_v0  ;;  %v582_v10 = vld [vmem:[%s1093_s2] ss:$0 sm:$0xff]  ;;  %666 = vmatpush3.bf16.msra.mxu1 %v725_v19  ;;  %v727_v21 = vld [vmem:[#allocation7 + $0x10] sm:$0xff]   ;;  %v729_v23 = vld [vmem:[#allocation7 + $0x20] sm:$0xff]   ;;  %p854_p4 = scmp.ne.s32.totalorder %s569_s17, %s853_s0  ;;  %p859_p6 = scmp.lt.s32.totalorder %s853_s0, %s853_s0 }
  0x4e   :  { %667 = vmatprep.subr.bf16.mxu1 %v889_v0  ;;  %v728_v22 = vld [vmem:[#allocation7 + $0x18] sm:$0xff]   ;;  %v730_v24 = vld [vmem:[#allocation7 + $0x28] sm:$0xff]   ;;  %v731_v25 = vld [vmem:[#allocation7 + $0x30] sm:$0xff]  }
  0x4f   :  { %v732_v26 = vld [vmem:[#allocation7 + $0x38] sm:$0xff]   ;;  %p860_p7 = por %p859_p6, %p858_p5 }
  0x50   :  { %648 = vmatpush3.bf16.msra.mxu0 %v717_v2  ;;  %v592_v45 = vld [vmem:[%s1094_s3] ss:$0 sm:$0xff] }
  0x51   :  { %649 = vmatprep.subr.bf16.mxu0 %v889_v0  ;;  %668 = vmatpush3.bf16.msra.mxu1 %v726_v20  ;;  %v593_v47 = vld [vmem:[%s1095_s4] ss:$0 sm:$0xff]  ;;  %p861_p8 = pnand %p860_p7, %p854_p4 }
  0x52   :  { %669 = vmatprep.subr.bf16.mxu1 %v889_v0  ;;  %v740_v19 = vld [vmem:[#allocation8 + $0x38] sm:$0xff]  }
  0x54   :  { %650 = vmatpush3.bf16.msra.mxu0 %v718_v3  ;;  %v596_v3 = vld [vmem:[%s1097_s6] ss:$0 sm:$0xff] }
  0x55   :  { %651 = vmatprep.subr.bf16.mxu0 %v889_v0  ;;  %670 = vmatpush3.bf16.msra.mxu1 %v727_v21 }
  0x56   :  { %671 = vmatprep.subr.bf16.mxu1 %v889_v0 }
  0x58   :  { %652 = vmatpush3.bf16.msra.mxu0 %v719_v4 }
  0x59   :  { %653 = vmatprep.subr.bf16.mxu0 %v889_v0  ;;  %672 = vmatpush3.bf16.msra.mxu1 %v728_v22 }
  0x5a   :  { %673 = vmatprep.subr.bf16.mxu1 %v889_v0 }
  0x5c   :  { %654 = vmatpush3.bf16.msra.mxu0 %v720_v5 }
  0x5d   :  { %655 = vmatprep.subr.bf16.mxu0 %v889_v0  ;;  %674 = vmatpush3.bf16.msra.mxu1 %v729_v23 }
  0x5e   :  { %675 = vmatprep.subr.bf16.mxu1 %v889_v0 }
  0x60   :  { %656 = vmatpush3.bf16.msra.mxu0 %v721_v6 }
  0x61   :  { %657 = vmatprep.subr.bf16.mxu0 %v889_v0  ;;  %676 = vmatpush3.bf16.msra.mxu1 %v730_v24 }
  0x62   :  { %677 = vmatprep.subr.bf16.mxu1 %v889_v0 }
  0x64   :  { %658 = vmatpush3.bf16.msra.mxu0 %v722_v7 }
  0x65   :  { %659 = vmatprep.subr.bf16.mxu0 %v889_v0  ;;  %678 = vmatpush3.bf16.msra.mxu1 %v731_v25 }
  0x66   :  { %679 = vmatprep.subr.bf16.mxu1 %v889_v0 }
  0x68   :  { %660 = vmatpush3.bf16.msra.mxu0 %v723_v8 }
  0x69   :  { %685 = vmatprep.subr.bf16.mxu0 %v889_v0  ;;  %680 = vmatpush3.bf16.msra.mxu1 %v732_v26 }
  0x6b   :  { %662 = vmatmul.mubr.bf16.vlgmr.msra.gmra.mrb[0].mxu0 %v724_v9 }
  0x6c   :  { %701 = vmatprep.mubr.msk.bf16.mxu0 %vm890_vm0, %v889_v0 }
 0x13e   :  { %v208_v11 = vpop.f32.mrb[0].mxu0 }
 0x13f   :  { %v209_v12 = vadd.f32 %v582_v10, %v208_v11  ;;  %v663_v13 = vpop.f32.mrb[1].mxu0 }
 0x140   :  { %v211_v14 = vpop.f32.mrb[2].mxu0  ;;  %v734_v13 = vld [vmem:[#allocation8 + $0x8] sm:$0xff]  }
 0x141   :  { %v212_v15 = vadd.f32 %v582_v10, %v211_v14  ;;  %215 = vadd.xlane.f32.xlu0 %v209_v12  ;;  %v664_v16 = vpop.f32.mrb[3].mxu0  ;;  %v219_v17 = vmul.f32 %v209_v12, %v209_v12  ;;  %v735_v14 = vld [vmem:[#allocation8 + $0x10] sm:$0xff]  }
 0x142   :  { %v737_v16 = vld [vmem:[#allocation8 + $0x20] sm:$0xff]  }
 0x143   :  { %221 = vadd.xlane.f32.xlu1 %v219_v17  ;;  %v220_v18 = vmul.f32 %v212_v15, %v212_v15  ;;  %v738_v17 = vld [vmem:[#allocation8 + $0x28] sm:$0xff]  }
 0x145   :  { %217 = vadd.xlane.f32.xlu0 %v212_v15 }
 0x147   :  { %223 = vadd.xlane.f32.xlu1 %v220_v18  ;;  %v739_v18 = vld [vmem:[#allocation8 + $0x30] sm:$0xff]  }
 0x1ce   :  { %v216_v27 = vpop.xlane.xlu0 %215 }
 0x1cf   :  { %v225_v28 = vmul.f32 0.015625, %v216_v27 }
 0x1d0   :  { %v222_v29 = vpop.xlane.xlu1 %221 }
 0x1d1   :  { %v229_v30 = vmul.f32 %v225_v28, %v225_v28  ;;  %v227_v31 = vmul.f32 0.015625, %v222_v29  ;;  %v235_v43 = vsub.f32 %v209_v12, %v225_v28  ;;  %v733_v12 = vld [vmem:[#allocation8] sm:$0xff]  }
 0x1d2   :  { %v218_v32 = vpop.xlane.xlu0 %217  ;;  %686 = vmatpush3.bf16.msra.mxu0 %v733_v12 }
 0x1d3   :  { %v231_v33 = vsub.f32 %v227_v31, %v229_v30  ;;  %v226_v34 = vmul.f32 0.015625, %v218_v32  ;;  %687 = vmatprep.subr.bf16.mxu0 %v889_v0 }
 0x1d4   :  { %v224_v35 = vpop.xlane.xlu1 %223 }
 0x1d5   :  { %v233_v36 = vmax.f32 %v231_v33, 0.0  ;;  %v230_v37 = vmul.f32 %v226_v34, %v226_v34  ;;  %v228_v38 = vmul.f32 0.015625, %v224_v35  ;;  %v236_v48 = vsub.f32 %v212_v15, %v226_v34  ;;  %v736_v15 = vld [vmem:[#allocation8 + $0x18] sm:$0xff]  }
 0x1d6   :  { %688 = vmatpush3.bf16.msra.mxu0 %v734_v13 }
 0x1d7   :  { %v237_v39 = vadd.f32 1e-05, %v233_v36  ;;  %v232_v40 = vsub.f32 %v228_v38, %v230_v37  ;;  %689 = vmatprep.subr.bf16.mxu0 %v889_v0  ;;  %v605_v37 = vld [vmem:[%s1098_s7] ss:$0 sm:$0xff] }
 0x1d9   :  { %741 = vrsqrt.f32 %v237_v39  ;;  %v234_v41 = vmax.f32 %v232_v40, 0.0 }
 0x1da   :  { %690 = vmatpush3.bf16.msra.mxu0 %v735_v14 }
 0x1db   :  { %v238_v42 = vadd.f32 1e-05, %v234_v41  ;;  %691 = vmatprep.subr.bf16.mxu0 %v889_v0  ;;  %v606_v41 = vld [vmem:[%s1099_s8] ss:$0 sm:$0xff] }
 0x1dd   :  { %743 = vrsqrt.f32 %v238_v42 }
 0x1de   :  { %692 = vmatpush3.bf16.msra.mxu0 %v736_v15 }
 0x1df   :  { %693 = vmatprep.subr.bf16.mxu0 %v889_v0 }
 0x1e2   :  { %694 = vmatpush3.bf16.msra.mxu0 %v737_v16 }
 0x1e3   :  { %v742_v44 = vpop.eup %741  ;;  %695 = vmatprep.subr.bf16.mxu0 %v889_v0 }
 0x1e4   :  { %v241_v46 = vmul.f32 %v742_v44, %v235_v43 }
 0x1e6   :  { %v250_v49 = vmul.f32 %v592_v45, %v241_v46  ;;  %696 = vmatpush3.bf16.msra.mxu0 %v738_v17 }
 0x1e7   :  { %v744_v50 = vpop.eup %743  ;;  %697 = vmatprep.subr.bf16.mxu0 %v889_v0 }
 0x1e8   :  { %v242_v51 = vmul.f32 %v744_v50, %v236_v48  ;;  %v259_v52 = vadd.f32 %v593_v47, %v250_v49 }
 0x1ea   :  { %v251_v53 = vmul.f32 %v592_v45, %v242_v51  ;;  %v594_v54 = vmul.f32 -1.442695, %v259_v52  ;;  %698 = vmatpush3.bf16.msra.mxu0 %v739_v18 }
 0x1eb   :  { %699 = vmatprep.subr.bf16.mxu0 %v889_v0 }
 0x1ec   :  { %v260_v55 = vadd.f32 %v593_v47, %v251_v53  ;;  %745 = vpow2.f32 %v594_v54 }
 0x1ee   :  { %v595_v56 = vmul.f32 -1.442695, %v260_v55  ;;  %700 = vmatpush3.bf16.msra.mxu0 %v740_v19 }
 0x1f0   :  { %747 = vpow2.f32 %v595_v56 }
 0x1f6   :  { %v746_v57 = vpop.eup %745 }
 0x1f7   :  { %v267_v58 = vadd.f32 1.0, %v746_v57 }
 0x1f9   :  { %749 = vrcp.f32 %v267_v58  ;;  %v609_v58 = vld [vmem:[%s1101_s10] ss:$0 sm:$0xff] }
 0x1fa   :  { %v748_v59 = vpop.eup %747 }
 0x1fb   :  { %v268_v60 = vadd.f32 1.0, %v748_v59 }
 0x1fd   :  { %751 = vrcp.f32 %v268_v60 }
 0x203   :  { %v750_v61 = vpop.eup %749 }
 0x204   :  { %v273_v63 = vmul.f32 %v750_v61, %v259_v52 }
 0x207   :  { %v752_v62 = vpop.eup %751 }
 0x208   :  { %v274_v1 = vmul.f32 %v752_v62, %v260_v55 }
 0x20a   :  { %v275_v2 = vpack.c.bf16 %v274_v1, %v273_v63 }
 0x20c   :  { %682 = vmatmul.mubr.bf16.vlgmr.msra.gmra.mrb[0].mxu1 %v275_v2 }
 0x2df   :  { %v381_v4 = vpop.f32.mrb[0].mxu1 }
 0x2e0   :  { %v382_v5 = vadd.f32 %v596_v3, %v381_v4  ;;  %v683_v6 = vpop.f32.mrb[1].mxu1 }
 0x2e1   :  { %v384_v7 = vpop.f32.mrb[2].mxu1 }
 0x2e2   :  { %v385_v8 = vadd.f32 %v596_v3, %v384_v7  ;;  %388 = vadd.xlane.f32.xlu0 %v382_v5  ;;  %v684_v9 = vpop.f32.mrb[3].mxu1  ;;  %v392_v10 = vmul.f32 %v382_v5, %v382_v5 }
 0x2e4   :  { %390 = vadd.xlane.f32.xlu1 %v385_v8  ;;  %v393_v11 = vmul.f32 %v385_v8, %v385_v8 }
 0x2e6   :  { %394 = vadd.xlane.f32.xlu0 %v392_v10 }
 0x2e8   :  { %396 = vadd.xlane.f32.xlu1 %v393_v11 }
 0x36f   :  { %v389_v20 = vpop.xlane.xlu0 %388 }
 0x370   :  { %v398_v21 = vmul.f32 0.015625, %v389_v20 }
 0x371   :  { %v391_v22 = vpop.xlane.xlu1 %390 }
 0x372   :  { %v399_v23 = vmul.f32 0.015625, %v391_v22  ;;  %v402_v25 = vmul.f32 %v398_v21, %v398_v21  ;;  %v408_v0 = vsub.f32 %v382_v5, %v398_v21 }
 0x373   :  { %v395_v24 = vpop.xlane.xlu0 %394 }
 0x374   :  { %v400_v26 = vmul.f32 0.015625, %v395_v24  ;;  %v403_v28 = vmul.f32 %v399_v23, %v399_v23  ;;  %v409_v38 = vsub.f32 %v385_v8, %v399_v23 }
 0x375   :  { %v397_v27 = vpop.xlane.xlu1 %396 }
 0x376   :  { %v404_v29 = vsub.f32 %v400_v26, %v402_v25  ;;  %v401_v30 = vmul.f32 0.015625, %v397_v27 }
 0x378   :  { %v406_v31 = vmax.f32 %v404_v29, 0.0  ;;  %v405_v32 = vsub.f32 %v401_v30, %v403_v28 }
 0x37a   :  { %v410_v33 = vadd.f32 1e-05, %v406_v31  ;;  %v407_v34 = vmax.f32 %v405_v32, 0.0 }
 0x37c   :  { %753 = vrsqrt.f32 %v410_v33  ;;  %v411_v35 = vadd.f32 1e-05, %v407_v34 }
 0x37e   :  { %755 = vrsqrt.f32 %v411_v35 }
 0x386   :  { %v754_v36 = vpop.eup %753 }
 0x387   :  { %v414_v39 = vmul.f32 %v754_v36, %v408_v0 }
 0x388   :  { %v756_v40 = vpop.eup %755 }
 0x389   :  { %v415_v42 = vmul.f32 %v756_v40, %v409_v38  ;;  %v423_v43 = vmul.f32 %v605_v37, %v414_v39 }
 0x38b   :  { %v424_v44 = vmul.f32 %v605_v37, %v415_v42  ;;  %v432_v45 = vadd.f32 %v606_v41, %v423_v43 }
 0x38d   :  { %v433_v46 = vadd.f32 %v606_v41, %v424_v44  ;;  %v607_v47 = vmul.f32 -1.442695, %v432_v45 }
 0x38f   :  { %757 = vpow2.f32 %v607_v47  ;;  %v608_v48 = vmul.f32 -1.442695, %v433_v46 }
 0x391   :  { %759 = vpow2.f32 %v608_v48 }
 0x399   :  { %v758_v49 = vpop.eup %757 }
 0x39a   :  { %v440_v50 = vadd.f32 1.0, %v758_v49 }
 0x39b   :  { %v760_v51 = vpop.eup %759 }
 0x39c   :  { %v441_v52 = vadd.f32 1.0, %v760_v51  ;;  %761 = vrcp.f32 %v440_v50 }
 0x39e   :  { %763 = vrcp.f32 %v441_v52 }
 0x3a6   :  { %v762_v53 = vpop.eup %761 }
 0x3a7   :  { %v446_v55 = vmul.f32 %v762_v53, %v432_v45 }
 0x3a8   :  { %v764_v54 = vpop.eup %763 }
 0x3a9   :  { %v447_v56 = vmul.f32 %v764_v54, %v433_v46 }
 0x3ab   :  { %v448_v57 = vpack.c.bf16 %v447_v56, %v446_v55 }
 0x3ad   :  { %702 = vmatmul.mubr.bf16.vlgmr.msra.gmra.mrb[4].mxu0 %v448_v57 }
 0x480   :  { %v554_v59 = vpop.f32.mrb[4].mxu0 }
 0x481   :  { %v555_v60 = vadd.f32 %v609_v58, %v554_v59  ;;  %v703_v61 = vpop.f32.mrb[5].mxu0 }
 0x482   :  { %v557_v62 = vpop.f32.mrb[6].mxu0 }
 0x483   :  { %561 = vst [vmem:[#allocation10] sm:$0xff] %v555_v60  ;;  %v558_v63 = vadd.f32 %v609_v58, %v557_v62  ;;  %v704_v1 = vpop.f32.mrb[7].mxu0 }
 0x485   :  { %562 = vst [vmem:[#allocation10 + $0x8] sm:$0xff] %v558_v63 }
 0x486   :  { %864 = shalt.err (!%p861_p8)
}
 0x487   :  { %s865_s19 = scalar_lea.hbm %s1102_s11, 256 }
 0x488   :  { %p866_p9 = scmp.ne.s32.totalorder %s1102_s11, %s865_s19  ;;  %p869_p10 = scmp.lt.u32.totalorder %s865_s19, %s1102_s11 }
 0x48a   :  { %p871_p11 = pnand %p869_p10, %p866_p9 }
 0x48c   :  { %874 = shalt.err (!%p871_p11)
}
 0x48d   :  { %s892_s18 = smov 128   ;;  %s893_s24 = smov 8  }
 0x48e   :  { %574 = dma.vmem_to_hbm [thread:$0]  %s569_s17, 256, %s1102_s11, [#allocation4], %s892_s18, %s892_s18, %s893_s24  }
 0x48f   :  { %881 = dma.done.wait [#allocation4], 256  }
 0x490   :  { %882 = vsyncadd [#allocation4], 4294967040 }
 0x491   :  { %578 = vsyncpa [#allocation3], 1 }
 0x492   :  { %579 = vsyncpa [#allocation6], 1 }
 0x493   :  { %580 = vsyncpa [#allocation9], 1 }
 0x494   :  { %581 = vsyncpa [#allocation4], 1 }

</bundles_post_ra>
